<compile_context>
chip_gen: v6e
topology: v6e:2x2x1
jax: 0.10.0
libtpu: 0.0.40
codegen_flags: <defaults>
</compile_context>

<pallas_src>
import functools

import jax
import jax.numpy as jnp
from jax.experimental import pallas as pl
from jax.experimental.pallas import tpu as pltpu


def _round_up(x, m):
    return (x + m - 1) // m * m


# ---------------------------------------------------------------------------
# Space-to-depth helpers (stride-s conv == stride-1 conv over s2d(s) input).
# Channel order of the s2d output is (row-offset a, col-offset b, channel c).
# ---------------------------------------------------------------------------
def _nchw_to_s2d_nhwc(x_nchw, s):
    n, c, h, w = x_nchw.shape
    hp, wp = h // s, w // s
    x = x_nchw[:, :, : hp * s, : wp * s].reshape(n, c, hp, s, wp, s)
    x = jnp.transpose(x, (0, 2, 4, 3, 5, 1))            # (n, hp, wp, a, b, c)
    return x.reshape(n, hp, wp, s * s * c)


def _s2d_nhwc(x_nhwc, s):
    if s == 1:
        return x_nhwc
    n, h, w, c = x_nhwc.shape
    hp, wp = h // s, w // s
    x = x_nhwc[:, : hp * s, : wp * s, :].reshape(n, hp, s, wp, s, c)
    x = jnp.transpose(x, (0, 1, 3, 2, 4, 5))            # (n, hp, wp, a, b, c)
    return x.reshape(n, hp, wp, s * s * c)


def _prep_conv_weight(w_oihw, s, icp, ocp):
    """(OC, IC, KH, KW) -> (kh'*kw'*icp, ocp) matching the in-kernel im2col:
    K index = tap*icp + (a*s + b)*IC + c with tap = p'*kw' + q'.
    Extra input channels (icp > s*s*IC) / output channels (ocp > OC) are zero."""
    oc, ic, kh, kw = w_oihw.shape
    kp_h, kp_w = kh // s, kw // s
    w = w_oihw.reshape(oc, ic, kp_h, s, kp_w, s)
    w = jnp.transpose(w, (2, 4, 3, 5, 1, 0))             # (p', q', a, b, c, oc)
    w = w.reshape(kp_h * kp_w, s * s * ic, oc)
    w = jnp.pad(w, ((0, 0), (0, icp - s * s * ic), (0, ocp - oc)))
    return w.reshape(kp_h * kp_w * icp, ocp).astype(jnp.bfloat16)


# ---------------------------------------------------------------------------
# Conv2d (+ReLU) kernel: one grid step processes tile_b images.
# ---------------------------------------------------------------------------
def _conv_kernel(x_ref, w_ref, b_ref, o_ref, col_ref, *, kp_h, kp_w, oh, ow, tile_b):
    # x_ref  : (BT, hp, wp, icp)              bf16  space-to-depth'd input tile
    # w_ref  : (kp_h*kp_w*icp, ocp)           bf16  tap-concatenated weight
    # b_ref  : (1, ocp)                       f32
    # o_ref  : (BT*oh*ow, ocp)                bf16
    # col_ref: (BT*oh*ow, kp_h*kp_w*icp)      bf16  VMEM im2col scratch
    icp = x_ref.shape[-1]
    m = tile_b * oh * ow
    # Build the im2col tile in VMEM from contiguous patch slices (one per tap).
    for p in range(kp_h):
        for q in range(kp_w):
            t = p * kp_w + q
            patch = x_ref[:, pl.ds(p, oh), pl.ds(q, ow), :]       # (BT, oh, ow, icp)
            col_ref[:, t * icp:(t + 1) * icp] = patch.reshape(m, icp)
    # Single deep-K MXU matmul (f32 accumulate) + minimal bias/ReLU/cast epilogue.
    acc = jnp.dot(col_ref[...], w_ref[...], preferred_element_type=jnp.float32)
    acc = jnp.maximum(acc + b_ref[...], 0.0)
    o_ref[...] = acc.astype(o_ref.dtype)


def conv2d_pallas(x_s2d, w_oihw, b, stride, oc_pad):
    """x_s2d: (N, hp, wp, icp) bf16, already space-to-depth'd for `stride`
    (icp >= stride*stride*IC; extra channels must be zero).
    Returns (N_pad, oh, ow, oc_pad) bf16 with ReLU; channels >= OC are zero."""
    oc, ic, kh, kw = w_oihw.shape
    n, hp, wp, icp = x_s2d.shape
    assert kh % stride == 0 and kw % stride == 0
    assert icp >= stride * stride * ic
    kp_h, kp_w = kh // stride, kw // stride
    oh, ow = hp - kp_h + 1, wp - kp_w + 1

    w = _prep_conv_weight(w_oihw, stride, icp, oc_pad)    # (T*icp, oc_pad) bf16
    b2 = jnp.pad(b.astype(jnp.float32), (0, oc_pad - oc)).reshape(1, oc_pad)

    # Batch tile: 16 images per grid step (keeps block rows a multiple of 16 for
    # the bf16 output and amortizes per-step overhead); whole batch if smaller.
    tile_b = n if n < 16 else 16
    n_pad = _round_up(n, tile_b)
    if n_pad != n:
        x_s2d = jnp.pad(x_s2d, ((0, n_pad - n), (0, 0), (0, 0), (0, 0)))

    m_tile = tile_b * oh * ow
    kernel = functools.partial(_conv_kernel, kp_h=kp_h, kp_w=kp_w,
                               oh=oh, ow=ow, tile_b=tile_b)
    out = pl.pallas_call(
        kernel,
        out_shape=jax.ShapeDtypeStruct((n_pad * oh * ow, oc_pad), jnp.bfloat16),
        grid=(n_pad // tile_b,),
        in_specs=[
            pl.BlockSpec((tile_b, hp, wp, icp), lambda i: (i, 0, 0, 0)),
            pl.BlockSpec(w.shape, lambda i: (0, 0)),
            pl.BlockSpec((1, oc_pad), lambda i: (0, 0)),
        ],
        out_specs=pl.BlockSpec((m_tile, oc_pad), lambda i: (i, 0)),
        scratch_shapes=[pltpu.VMEM((m_tile, kp_h * kp_w * icp), jnp.bfloat16)],
        compiler_params=pltpu.CompilerParams(
            dimension_semantics=("parallel",),
            vmem_limit_bytes=48 * 1024 * 1024),   # <= ~48 MiB ceiling (v7x safe)
    )(x_s2d, w, b2)
    return out.reshape(n_pad, oh, ow, oc_pad)


# ---------------------------------------------------------------------------
# Fused FC stack: one pallas_call runs ALL linear layers (ReLU between, identity
# on the last).  M-tiled + pipelined; all weights resident in VMEM; K/N padded
# to multiples of 128 for lane-dense stores and clean MXU tiles.
# ---------------------------------------------------------------------------
FC_TILE_M = 256   # fills the 256-wide MXU M on v6e/v7x; harmless on v5e.


def _fc_stack_kernel(*refs, n_layers):
    x_ref, o_ref = refs[0], refs[-1]
    h = x_ref[...]                                        # (TM, K0p) bf16
    for i in range(n_layers):
        w = refs[1 + 2 * i][...]                          # (Kp, Np) bf16
        bias = refs[2 + 2 * i][...]                       # (1, Np)  f32
        acc = jnp.dot(h, w, preferred_element_type=jnp.float32) + bias
        if i < n_layers - 1:
            h = jnp.maximum(acc, 0.0).astype(jnp.bfloat16)  # ReLU
        else:
            h = acc                                         # last layer: Identity
    o_ref[...] = h.astype(o_ref.dtype)


def fc_stack_pallas(x, layers):
    """x: (M, K0); layers: list of (w (K, N), b (N,)).  Returns (M, N_last) f32."""
    M, K0 = x.shape
    n_layers = len(layers)

    prev_p = _round_up(K0, 128)
    k0_pad = prev_p
    ws, bs = [], []
    last_n = last_np = None
    for (w, b) in layers:
        k_i, n_i = w.shape
        n_ip = _round_up(n_i, 128)
        wp = jnp.pad(w.astype(jnp.bfloat16), ((0, prev_p - k_i), (0, n_ip - n_i)))
        bp = jnp.pad(b.astype(jnp.float32).reshape(1, n_i), ((0, 0), (0, n_ip - n_i)))
        ws.append(wp)
        bs.append(bp)
        prev_p = n_ip
        last_n, last_np = n_i, n_ip

    tm = min(FC_TILE_M, _round_up(M, 8))
    m_pad = _round_up(M, tm)
    xp = jnp.pad(x.astype(jnp.bfloat16), ((0, m_pad - M), (0, k0_pad - K0)))

    in_specs = [pl.BlockSpec((tm, k0_pad), lambda i: (i, 0))]
    operands = [xp]
    for wp, bp in zip(ws, bs):
        in_specs.append(pl.BlockSpec(wp.shape, lambda i: (0, 0)))
        in_specs.append(pl.BlockSpec(bp.shape, lambda i: (0, 0)))
        operands.extend([wp, bp])

    out = pl.pallas_call(
        functools.partial(_fc_stack_kernel, n_layers=n_layers),
        out_shape=jax.ShapeDtypeStruct((m_pad, last_np), jnp.float32),
        grid=(m_pad // tm,),
        in_specs=in_specs,
        out_specs=pl.BlockSpec((tm, last_np), lambda i: (i, 0)),
        compiler_params=pltpu.CompilerParams(
            dimension_semantics=("parallel",),
            vmem_limit_bytes=48 * 1024 * 1024),
    )(*operands)
    return out[:M, :last_n]


# ---------------------------------------------------------------------------
# Parameter init (deterministic, synthetic — not a checkpoint load)
# ---------------------------------------------------------------------------
def init_params(key, in_channels, spatial, fc_size_list):
    def _conv_out_dims():
        h = spatial
        for k, s in ((8, 4), (4, 2), (3, 1)):
            h = (h - k) // s + 1
        return 64 * h * h

    keys = jax.random.split(key, 16)

    def u(k, shape, fan_in):
        bound = 1.0 / jnp.sqrt(fan_in)
        return jax.random.uniform(k, shape, jnp.float32, -bound, bound)

    params = {
        "conv1_w": u(keys[0], (32, in_channels, 8, 8), in_channels * 8 * 8),
        "conv1_b": u(keys[1], (32,), in_channels * 8 * 8),
        "conv2_w": u(keys[2], (64, 32, 4, 4), 32 * 4 * 4),
        "conv2_b": u(keys[3], (64,), 32 * 4 * 4),
        "conv3_w": u(keys[4], (64, 64, 3, 3), 64 * 3 * 3),
        "conv3_b": u(keys[5], (64,), 64 * 3 * 3),
    }
    conv_out_dims = _conv_out_dims()
    fc = []
    prev = conv_out_dims
    for i, n_out in enumerate(fc_size_list):
        w = u(keys[6 + 2 * i], (prev, n_out), prev)   # stored (K, N), K in CHW order
        b = u(keys[7 + 2 * i], (n_out,), prev)
        fc.append((w, b))
        prev = n_out
    params["fc"] = fc
    return params, conv_out_dims


# ---------------------------------------------------------------------------
# Forward pass (mirrors AtariDQN.forward with activation = ReLU)
# ---------------------------------------------------------------------------
def atari_dqn_forward(params, x_nchw):
    batch = x_nchw.shape[0]
    # NCHW -> NHWC + f32->bf16 + space-to-depth(4): one fused XLA relayout pass.
    x = _nchw_to_s2d_nhwc(x_nchw.astype(jnp.bfloat16), 4)

    x = conv2d_pallas(x, params["conv1_w"], params["conv1_b"], 4, oc_pad=32)
    x = _s2d_nhwc(x, 2)                                   # prep for stride-2 conv2
    x = conv2d_pallas(x, params["conv2_w"], params["conv2_b"], 2, oc_pad=128)
    x = conv2d_pallas(x, params["conv3_w"], params["conv3_b"], 1, oc_pad=128)
    # Remaining headroom: fuse conv1..conv3 + FC into a single pallas_call with
    # activations resident in VMEM (all per-tile buffers total well under 8 MiB).

    n_pad, oh, ow, cp = x.shape
    flat = x.reshape(n_pad, oh * ow * cp)                 # free NHWC flatten

    # Fold PyTorch's NCHW (C*H*W) flatten order AND conv3's zero channel padding
    # into fc1's weight rows once at trace time.
    fc = params["fc"]
    w0, b0 = fc[0]
    k0, n0 = w0.shape
    c_real = k0 // (oh * ow)
    w0 = w0.reshape(c_real, oh, ow, n0)
    w0 = jnp.pad(w0, ((0, cp - c_real), (0, 0), (0, 0), (0, 0)))
    w0 = jnp.transpose(w0, (1, 2, 0, 3)).reshape(oh * ow * cp, n0)
    layers = [(w0, b0)] + list(fc[1:])

    q = fc_stack_pallas(flat, layers)
    return q[:batch]


# ---------------------------------------------------------------------------
# Plain-XLA f32 reference (loose numerical check only)
# ---------------------------------------------------------------------------
def _reference_forward(params, x_nchw):
    def conv(x, w, b, s):
        y = jax.lax.conv_general_dilated(
            x, w, window_strides=(s, s), padding="VALID",
            dimension_numbers=("NCHW", "OIHW", "NCHW"))
        return jax.nn.relu(y + b.reshape(1, -1, 1, 1))

    x = x_nchw.astype(jnp.float32)
    x = conv(x, params["conv1_w"], params["conv1_b"], 4)
    x = conv(x, params["conv2_w"], params["conv2_b"], 2)
    x = conv(x, params["conv3_w"], params["conv3_b"], 1)
    h = x.reshape(x.shape[0], -1)
    fc = params["fc"]
    for i, (w, b) in enumerate(fc):
        h = h @ w + b
        if i < len(fc) - 1:
            h = jax.nn.relu(h)
    return h


if __name__ == "__main__":
    # Small but conv-stack-valid shapes: batch=2, channels=4, spatial=36.
    # (36-8)//4+1=8 -> (8-4)//2+1=3 -> (3-3)//1+1=1  => conv_out_dims = 64.
    batch, channels, spatial = 2, 4, 36
    fc_size_list = [32, 6]                # hidden 32, 6 actions

    key = jax.random.PRNGKey(0)
    k_params, k_x = jax.random.split(key)
    params, conv_out_dims = init_params(k_params, channels, spatial, fc_size_list)
    x = jax.random.normal(k_x, (batch, channels, spatial, spatial), jnp.float32)

    q = jax.jit(atari_dqn_forward)(params, x)
    q = jax.block_until_ready(q)
    assert q.shape == (batch, fc_size_list[-1]), q.shape
    assert q.dtype == jnp.float32
    assert bool(jnp.all(jnp.isfinite(q)))

    # Loose check vs. plain-XLA f32 reference (kernels use bf16 MXU operands).
    q_ref = jax.block_until_ready(_reference_forward(params, x))
    err = float(jnp.max(jnp.abs(q - q_ref)))
    tol = 0.05 * float(jnp.max(jnp.abs(q_ref))) + 2e-2
    assert err <= tol, (err, tol)
    print("KERNEL_OK")
</pallas_src>

<mosaic_0001>
module attributes {stable_mosaic.version = 11 : i64} {
  func.func @_conv_kernel(%arg0: i32, %arg1: memref<2x9x9x64xbf16, #tpu.memory_space<vmem>>, %arg2: memref<256x32xbf16, #tpu.memory_space<vmem>>, %arg3: memref<1x32xf32, #tpu.memory_space<vmem>>, %arg4: memref<128x32xbf16, #tpu.memory_space<vmem>>, %arg5: memref<128x256xbf16, #tpu.memory_space<vmem>>) attributes {dimension_semantics = [#tpu.dimension_semantics<parallel>], iteration_bounds = array<i64: 1>, scalar_prefetch = 0 : i64, scratch_operands = 1 : i64, tpu.core_type = #tpu.core_type<tc>, window_params = [{transform_indices = @transform_0, window_bounds = array<i64: 2, 9, 9, 64>}, {pipeline_mode = #tpu.pipeline_mode<synchronous>, transform_indices = @transform_1, window_bounds = array<i64: 256, 32>}, {pipeline_mode = #tpu.pipeline_mode<synchronous>, transform_indices = @transform_2, window_bounds = array<i64: 1, 32>}, {transform_indices = @transform_3, window_bounds = array<i64: 128, 32>}]} {
    %c0 = arith.constant 0 : index
    %c0_0 = arith.constant 0 : index
    %c0_1 = arith.constant 0 : index
    %c0_2 = arith.constant 0 : index
    %0 = vector.load %arg1[%c0, %c0_0, %c0_1, %c0_2] : memref<2x9x9x64xbf16, #tpu.memory_space<vmem>>, vector<2x8x8x64xbf16>
    %1 = vector.shape_cast %0 : vector<2x8x8x64xbf16> to vector<128x64xbf16>
    %c0_3 = arith.constant 0 : index
    %c0_4 = arith.constant 0 : index
    %2 = vector.load %arg5[%c0_3, %c0_4] : memref<128x256xbf16, #tpu.memory_space<vmem>>, vector<128x64xbf16>
    tpu.vector_store %arg5[%c0_3, %c0_4], %1 {strides = array<i32>} : memref<128x256xbf16, #tpu.memory_space<vmem>>, vector<128x64xbf16>,
    %c0_5 = arith.constant 0 : index
    %c0_6 = arith.constant 0 : index
    %c1 = arith.constant 1 : index
    %c0_7 = arith.constant 0 : index
    %3 = vector.load %arg1[%c0_5, %c0_6, %c1, %c0_7] : memref<2x9x9x64xbf16, #tpu.memory_space<vmem>>, vector<2x8x8x64xbf16>
    %4 = vector.shape_cast %3 : vector<2x8x8x64xbf16> to vector<128x64xbf16>
    %c0_8 = arith.constant 0 : index
    %c64 = arith.constant 64 : index
    %5 = vector.load %arg5[%c0_8, %c64] : memref<128x256xbf16, #tpu.memory_space<vmem>>, vector<128x64xbf16>
    tpu.vector_store %arg5[%c0_8, %c64], %4 {strides = array<i32>} : memref<128x256xbf16, #tpu.memory_space<vmem>>, vector<128x64xbf16>,
    %c0_9 = arith.constant 0 : index
    %c1_10 = arith.constant 1 : index
    %c0_11 = arith.constant 0 : index
    %c0_12 = arith.constant 0 : index
    %6 = vector.load %arg1[%c0_9, %c1_10, %c0_11, %c0_12] : memref<2x9x9x64xbf16, #tpu.memory_space<vmem>>, vector<2x8x8x64xbf16>
    %7 = vector.shape_cast %6 : vector<2x8x8x64xbf16> to vector<128x64xbf16>
    %c0_13 = arith.constant 0 : index
    %c128 = arith.constant 128 : index
    %8 = vector.load %arg5[%c0_13, %c128] : memref<128x256xbf16, #tpu.memory_space<vmem>>, vector<128x64xbf16>
    tpu.vector_store %arg5[%c0_13, %c128], %7 {strides = array<i32>} : memref<128x256xbf16, #tpu.memory_space<vmem>>, vector<128x64xbf16>,
    %c0_14 = arith.constant 0 : index
    %c1_15 = arith.constant 1 : index
    %c1_16 = arith.constant 1 : index
    %c0_17 = arith.constant 0 : index
    %9 = vector.load %arg1[%c0_14, %c1_15, %c1_16, %c0_17] : memref<2x9x9x64xbf16, #tpu.memory_space<vmem>>, vector<2x8x8x64xbf16>
    %10 = vector.shape_cast %9 : vector<2x8x8x64xbf16> to vector<128x64xbf16>
    %c0_18 = arith.constant 0 : index
    %c192 = arith.constant 192 : index
    %11 = vector.load %arg5[%c0_18, %c192] : memref<128x256xbf16, #tpu.memory_space<vmem>>, vector<128x64xbf16>
    tpu.vector_store %arg5[%c0_18, %c192], %10 {strides = array<i32>} : memref<128x256xbf16, #tpu.memory_space<vmem>>, vector<128x64xbf16>,
    %c0_19 = arith.constant 0 : index
    %c0_20 = arith.constant 0 : index
    %12 = vector.load %arg5[%c0_19, %c0_20] : memref<128x256xbf16, #tpu.memory_space<vmem>>, vector<128x256xbf16>
    %c0_21 = arith.constant 0 : index
    %c0_22 = arith.constant 0 : index
    %13 = vector.load %arg2[%c0_21, %c0_22] : memref<256x32xbf16, #tpu.memory_space<vmem>>, vector<256x32xbf16>
    %cst = arith.constant dense<0.000000e+00> : vector<128x32xf32>
    %14 = tpu.matmul %12, %13, %cst {dimension_numbers = #tpu.dot_dimension_numbers<[1], [0], [0], [1], [0, 0, 1, 1], [], []>} : vector<128x256xbf16>, vector<256x32xbf16>, vector<128x32xf32> -> vector<128x32xf32>
    %c0_23 = arith.constant 0 : index
    %c0_24 = arith.constant 0 : index
    %15 = vector.load %arg3[%c0_23, %c0_24] : memref<1x32xf32, #tpu.memory_space<vmem>>, vector<1x32xf32>
    %16 = vector.broadcast %15 : vector<1x32xf32> to vector<128x32xf32>
    %17 = arith.addf %14, %16 : vector<128x32xf32>
    %cst_25 = arith.constant 0.000000e+00 : f32
    %18 = vector.broadcast %cst_25 : f32 to vector<128x32xf32>
    %19 = arith.maximumf %17, %18 : vector<128x32xf32>
    %20 = arith.truncf %19 : vector<128x32xf32> to vector<128x32xbf16>
    %c0_26 = arith.constant 0 : index
    %c0_27 = arith.constant 0 : index
    %21 = vector.load %arg4[%c0_26, %c0_27] : memref<128x32xbf16, #tpu.memory_space<vmem>>, vector<128x32xbf16>
    tpu.vector_store %arg4[%c0_26, %c0_27], %20 {strides = array<i32>} : memref<128x32xbf16, #tpu.memory_space<vmem>>, vector<128x32xbf16>,
    return
  }
  func.func @transform_0(%arg0: i32) -> (i32, i32, i32, i32) {
    %c0_i32 = arith.constant 0 : i32
    %c0_i32_0 = arith.constant 0 : i32
    %c0_i32_1 = arith.constant 0 : i32
    %c0_i32_2 = arith.constant 0 : i32
    return %arg0, %c0_i32, %c0_i32_0, %c0_i32_1 : i32, i32, i32, i32
  }
  func.func @transform_1(%arg0: i32) -> (i32, i32) {
    %c0_i32 = arith.constant 0 : i32
    %c0_i32_0 = arith.constant 0 : i32
    %c0_i32_1 = arith.constant 0 : i32
    return %c0_i32, %c0_i32_0 : i32, i32
  }
  func.func @transform_2(%arg0: i32) -> (i32, i32) {
    %c0_i32 = arith.constant 0 : i32
    %c0_i32_0 = arith.constant 0 : i32
    %c0_i32_1 = arith.constant 0 : i32
    return %c0_i32, %c0_i32_0 : i32, i32
  }
  func.func @transform_3(%arg0: i32) -> (i32, i32) {
    %c0_i32 = arith.constant 0 : i32
    %c0_i32_0 = arith.constant 0 : i32
    return %arg0, %c0_i32 : i32, i32
  }
}

module attributes {stable_mosaic.version = 11 : i64} {
  func.func @_conv_kernel(%arg0: i32, %arg1: memref<2x4x4x128xbf16, #tpu.memory_space<vmem>>, %arg2: memref<512x128xbf16, #tpu.memory_space<vmem>>, %arg3: memref<1x128xf32, #tpu.memory_space<vmem>>, %arg4: memref<18x128xbf16, #tpu.memory_space<vmem>>, %arg5: memref<18x512xbf16, #tpu.memory_space<vmem>>) attributes {dimension_semantics = [#tpu.dimension_semantics<parallel>], iteration_bounds = array<i64: 1>, scalar_prefetch = 0 : i64, scratch_operands = 1 : i64, tpu.core_type = #tpu.core_type<tc>, window_params = [{transform_indices = @transform_0, window_bounds = array<i64: 2, 4, 4, 128>}, {pipeline_mode = #tpu.pipeline_mode<synchronous>, transform_indices = @transform_1, window_bounds = array<i64: 512, 128>}, {pipeline_mode = #tpu.pipeline_mode<synchronous>, transform_indices = @transform_2, window_bounds = array<i64: 1, 128>}, {transform_indices = @transform_3, window_bounds = array<i64: 18, 128>}]} {
    %c0 = arith.constant 0 : index
    %c0_0 = arith.constant 0 : index
    %c0_1 = arith.constant 0 : index
    %c0_2 = arith.constant 0 : index
    %0 = vector.load %arg1[%c0, %c0_0, %c0_1, %c0_2] : memref<2x4x4x128xbf16, #tpu.memory_space<vmem>>, vector<2x3x3x128xbf16>
    %1 = vector.shape_cast %0 : vector<2x3x3x128xbf16> to vector<18x128xbf16>
    %c0_3 = arith.constant 0 : index
    %c0_4 = arith.constant 0 : index
    %2 = vector.load %arg5[%c0_3, %c0_4] : memref<18x512xbf16, #tpu.memory_space<vmem>>, vector<18x128xbf16>
    tpu.vector_store %arg5[%c0_3, %c0_4], %1 {strides = array<i32>} : memref<18x512xbf16, #tpu.memory_space<vmem>>, vector<18x128xbf16>,
    %c0_5 = arith.constant 0 : index
    %c0_6 = arith.constant 0 : index
    %c1 = arith.constant 1 : index
    %c0_7 = arith.constant 0 : index
    %3 = vector.load %arg1[%c0_5, %c0_6, %c1, %c0_7] : memref<2x4x4x128xbf16, #tpu.memory_space<vmem>>, vector<2x3x3x128xbf16>
    %4 = vector.shape_cast %3 : vector<2x3x3x128xbf16> to vector<18x128xbf16>
    %c0_8 = arith.constant 0 : index
    %c128 = arith.constant 128 : index
    %5 = vector.load %arg5[%c0_8, %c128] : memref<18x512xbf16, #tpu.memory_space<vmem>>, vector<18x128xbf16>
    tpu.vector_store %arg5[%c0_8, %c128], %4 {strides = array<i32>} : memref<18x512xbf16, #tpu.memory_space<vmem>>, vector<18x128xbf16>,
    %c0_9 = arith.constant 0 : index
    %c1_10 = arith.constant 1 : index
    %c0_11 = arith.constant 0 : index
    %c0_12 = arith.constant 0 : index
    %6 = vector.load %arg1[%c0_9, %c1_10, %c0_11, %c0_12] : memref<2x4x4x128xbf16, #tpu.memory_space<vmem>>, vector<2x3x3x128xbf16>
    %7 = vector.shape_cast %6 : vector<2x3x3x128xbf16> to vector<18x128xbf16>
    %c0_13 = arith.constant 0 : index
    %c256 = arith.constant 256 : index
    %8 = vector.load %arg5[%c0_13, %c256] : memref<18x512xbf16, #tpu.memory_space<vmem>>, vector<18x128xbf16>
    tpu.vector_store %arg5[%c0_13, %c256], %7 {strides = array<i32>} : memref<18x512xbf16, #tpu.memory_space<vmem>>, vector<18x128xbf16>,
    %c0_14 = arith.constant 0 : index
    %c1_15 = arith.constant 1 : index
    %c1_16 = arith.constant 1 : index
    %c0_17 = arith.constant 0 : index
    %9 = vector.load %arg1[%c0_14, %c1_15, %c1_16, %c0_17] : memref<2x4x4x128xbf16, #tpu.memory_space<vmem>>, vector<2x3x3x128xbf16>
    %10 = vector.shape_cast %9 : vector<2x3x3x128xbf16> to vector<18x128xbf16>
    %c0_18 = arith.constant 0 : index
    %c384 = arith.constant 384 : index
    %11 = vector.load %arg5[%c0_18, %c384] : memref<18x512xbf16, #tpu.memory_space<vmem>>, vector<18x128xbf16>
    tpu.vector_store %arg5[%c0_18, %c384], %10 {strides = array<i32>} : memref<18x512xbf16, #tpu.memory_space<vmem>>, vector<18x128xbf16>,
    %c0_19 = arith.constant 0 : index
    %c0_20 = arith.constant 0 : index
    %12 = vector.load %arg5[%c0_19, %c0_20] : memref<18x512xbf16, #tpu.memory_space<vmem>>, vector<18x512xbf16>
    %c0_21 = arith.constant 0 : index
    %c0_22 = arith.constant 0 : index
    %13 = vector.load %arg2[%c0_21, %c0_22] : memref<512x128xbf16, #tpu.memory_space<vmem>>, vector<512x128xbf16>
    %cst = arith.constant dense<0.000000e+00> : vector<18x128xf32>
    %14 = tpu.matmul %12, %13, %cst {dimension_numbers = #tpu.dot_dimension_numbers<[1], [0], [0], [1], [0, 0, 1, 1], [], []>} : vector<18x512xbf16>, vector<512x128xbf16>, vector<18x128xf32> -> vector<18x128xf32>
    %c0_23 = arith.constant 0 : index
    %c0_24 = arith.constant 0 : index
    %15 = vector.load %arg3[%c0_23, %c0_24] : memref<1x128xf32, #tpu.memory_space<vmem>>, vector<1x128xf32>
    %16 = vector.broadcast %15 : vector<1x128xf32> to vector<18x128xf32>
    %17 = arith.addf %14, %16 : vector<18x128xf32>
    %cst_25 = arith.constant 0.000000e+00 : f32
    %18 = vector.broadcast %cst_25 : f32 to vector<18x128xf32>
    %19 = arith.maximumf %17, %18 : vector<18x128xf32>
    %20 = arith.truncf %19 : vector<18x128xf32> to vector<18x128xbf16>
    %c0_26 = arith.constant 0 : index
    %c0_27 = arith.constant 0 : index
    %21 = vector.load %arg4[%c0_26, %c0_27] : memref<18x128xbf16, #tpu.memory_space<vmem>>, vector<18x128xbf16>
    tpu.vector_store %arg4[%c0_26, %c0_27], %20 {strides = array<i32>} : memref<18x128xbf16, #tpu.memory_space<vmem>>, vector<18x128xbf16>,
    return
  }
  func.func @transform_0(%arg0: i32) -> (i32, i32, i32, i32) {
    %c0_i32 = arith.constant 0 : i32
    %c0_i32_0 = arith.constant 0 : i32
    %c0_i32_1 = arith.constant 0 : i32
    %c0_i32_2 = arith.constant 0 : i32
    return %arg0, %c0_i32, %c0_i32_0, %c0_i32_1 : i32, i32, i32, i32
  }
  func.func @transform_1(%arg0: i32) -> (i32, i32) {
    %c0_i32 = arith.constant 0 : i32
    %c0_i32_0 = arith.constant 0 : i32
    %c0_i32_1 = arith.constant 0 : i32
    return %c0_i32, %c0_i32_0 : i32, i32
  }
  func.func @transform_2(%arg0: i32) -> (i32, i32) {
    %c0_i32 = arith.constant 0 : i32
    %c0_i32_0 = arith.constant 0 : i32
    %c0_i32_1 = arith.constant 0 : i32
    return %c0_i32, %c0_i32_0 : i32, i32
  }
  func.func @transform_3(%arg0: i32) -> (i32, i32) {
    %c0_i32 = arith.constant 0 : i32
    %c0_i32_0 = arith.constant 0 : i32
    return %arg0, %c0_i32 : i32, i32
  }
}

module attributes {stable_mosaic.version = 11 : i64} {
  func.func @_fc_stack_kernel(%arg0: i32, %arg1: memref<8x128xbf16, #tpu.memory_space<vmem>>, %arg2: memref<128x128xbf16, #tpu.memory_space<vmem>>, %arg3: memref<1x128xf32, #tpu.memory_space<vmem>>, %arg4: memref<128x128xbf16, #tpu.memory_space<vmem>>, %arg5: memref<1x128xf32, #tpu.memory_space<vmem>>, %arg6: memref<8x128xf32, #tpu.memory_space<vmem>>) attributes {dimension_semantics = [#tpu.dimension_semantics<parallel>], iteration_bounds = array<i64: 1>, scalar_prefetch = 0 : i64, scratch_operands = 0 : i64, tpu.core_type = #tpu.core_type<tc>, window_params = [{transform_indices = @transform_0, window_bounds = array<i64: 8, 128>}, {pipeline_mode = #tpu.pipeline_mode<synchronous>, transform_indices = @transform_1, window_bounds = array<i64: 128, 128>}, {pipeline_mode = #tpu.pipeline_mode<synchronous>, transform_indices = @transform_2, window_bounds = array<i64: 1, 128>}, {pipeline_mode = #tpu.pipeline_mode<synchronous>, transform_indices = @transform_3, window_bounds = array<i64: 128, 128>}, {pipeline_mode = #tpu.pipeline_mode<synchronous>, transform_indices = @transform_4, window_bounds = array<i64: 1, 128>}, {transform_indices = @transform_5, window_bounds = array<i64: 8, 128>}]} {
    %c0 = arith.constant 0 : index
    %c0_0 = arith.constant 0 : index
    %0 = vector.load %arg1[%c0, %c0_0] : memref<8x128xbf16, #tpu.memory_space<vmem>>, vector<8x128xbf16>
    %c0_1 = arith.constant 0 : index
    %c0_2 = arith.constant 0 : index
    %1 = vector.load %arg2[%c0_1, %c0_2] : memref<128x128xbf16, #tpu.memory_space<vmem>>, vector<128x128xbf16>
    %c0_3 = arith.constant 0 : index
    %c0_4 = arith.constant 0 : index
    %2 = vector.load %arg3[%c0_3, %c0_4] : memref<1x128xf32, #tpu.memory_space<vmem>>, vector<1x128xf32>
    %cst = arith.constant dense<0.000000e+00> : vector<8x128xf32>
    %3 = tpu.matmul %0, %1, %cst {dimension_numbers = #tpu.dot_dimension_numbers<[1], [0], [0], [1], [0, 0, 1, 1], [], []>} : vector<8x128xbf16>, vector<128x128xbf16>, vector<8x128xf32> -> vector<8x128xf32>
    %4 = vector.broadcast %2 : vector<1x128xf32> to vector<8x128xf32>
    %5 = arith.addf %3, %4 : vector<8x128xf32>
    %cst_5 = arith.constant 0.000000e+00 : f32
    %6 = vector.broadcast %cst_5 : f32 to vector<8x128xf32>
    %7 = arith.maximumf %5, %6 : vector<8x128xf32>
    %8 = arith.truncf %7 : vector<8x128xf32> to vector<8x128xbf16>
    %c0_6 = arith.constant 0 : index
    %c0_7 = arith.constant 0 : index
    %9 = vector.load %arg4[%c0_6, %c0_7] : memref<128x128xbf16, #tpu.memory_space<vmem>>, vector<128x128xbf16>
    %c0_8 = arith.constant 0 : index
    %c0_9 = arith.constant 0 : index
    %10 = vector.load %arg5[%c0_8, %c0_9] : memref<1x128xf32, #tpu.memory_space<vmem>>, vector<1x128xf32>
    %cst_10 = arith.constant dense<0.000000e+00> : vector<8x128xf32>
    %11 = tpu.matmul %8, %9, %cst_10 {dimension_numbers = #tpu.dot_dimension_numbers<[1], [0], [0], [1], [0, 0, 1, 1], [], []>} : vector<8x128xbf16>, vector<128x128xbf16>, vector<8x128xf32> -> vector<8x128xf32>
    %12 = vector.broadcast %10 : vector<1x128xf32> to vector<8x128xf32>
    %13 = arith.addf %11, %12 : vector<8x128xf32>
    %c0_11 = arith.constant 0 : index
    %c0_12 = arith.constant 0 : index
    %14 = vector.load %arg6[%c0_11, %c0_12] : memref<8x128xf32, #tpu.memory_space<vmem>>, vector<8x128xf32>
    tpu.vector_store %arg6[%c0_11, %c0_12], %13 {strides = array<i32>} : memref<8x128xf32, #tpu.memory_space<vmem>>, vector<8x128xf32>,
    return
  }
  func.func @transform_0(%arg0: i32) -> (i32, i32) {
    %c0_i32 = arith.constant 0 : i32
    %c0_i32_0 = arith.constant 0 : i32
    return %arg0, %c0_i32 : i32, i32
  }
  func.func @transform_1(%arg0: i32) -> (i32, i32) {
    %c0_i32 = arith.constant 0 : i32
    %c0_i32_0 = arith.constant 0 : i32
    %c0_i32_1 = arith.constant 0 : i32
    return %c0_i32, %c0_i32_0 : i32, i32
  }
  func.func @transform_2(%arg0: i32) -> (i32, i32) {
    %c0_i32 = arith.constant 0 : i32
    %c0_i32_0 = arith.constant 0 : i32
    %c0_i32_1 = arith.constant 0 : i32
    return %c0_i32, %c0_i32_0 : i32, i32
  }
  func.func @transform_3(%arg0: i32) -> (i32, i32) {
    %c0_i32 = arith.constant 0 : i32
    %c0_i32_0 = arith.constant 0 : i32
    %c0_i32_1 = arith.constant 0 : i32
    return %c0_i32, %c0_i32_0 : i32, i32
  }
  func.func @transform_4(%arg0: i32) -> (i32, i32) {
    %c0_i32 = arith.constant 0 : i32
    %c0_i32_0 = arith.constant 0 : i32
    %c0_i32_1 = arith.constant 0 : i32
    return %c0_i32, %c0_i32_0 : i32, i32
  }
  func.func @transform_5(%arg0: i32) -> (i32, i32) {
    %c0_i32 = arith.constant 0 : i32
    %c0_i32_0 = arith.constant 0 : i32
    return %arg0, %c0_i32 : i32, i32
  }
}

module attributes {stable_mosaic.version = 11 : i64} {
  func.func @_conv_kernel(%arg0: i32, %arg1: memref<2x3x3x128xbf16, #tpu.memory_space<vmem>>, %arg2: memref<1152x128xbf16, #tpu.memory_space<vmem>>, %arg3: memref<1x128xf32, #tpu.memory_space<vmem>>, %arg4: memref<2x128xbf16, #tpu.memory_space<vmem>>, %arg5: memref<2x1152xbf16, #tpu.memory_space<vmem>>) attributes {dimension_semantics = [#tpu.dimension_semantics<parallel>], iteration_bounds = array<i64: 1>, scalar_prefetch = 0 : i64, scratch_operands = 1 : i64, tpu.core_type = #tpu.core_type<tc>, window_params = [{transform_indices = @transform_0, window_bounds = array<i64: 2, 3, 3, 128>}, {pipeline_mode = #tpu.pipeline_mode<synchronous>, transform_indices = @transform_1, window_bounds = array<i64: 1152, 128>}, {pipeline_mode = #tpu.pipeline_mode<synchronous>, transform_indices = @transform_2, window_bounds = array<i64: 1, 128>}, {transform_indices = @transform_3, window_bounds = array<i64: 2, 128>}]} {
    %c0 = arith.constant 0 : index
    %c0_0 = arith.constant 0 : index
    %c0_1 = arith.constant 0 : index
    %c0_2 = arith.constant 0 : index
    %0 = vector.load %arg1[%c0, %c0_0, %c0_1, %c0_2] : memref<2x3x3x128xbf16, #tpu.memory_space<vmem>>, vector<2x1x1x128xbf16>
    %1 = vector.shape_cast %0 : vector<2x1x1x128xbf16> to vector<2x128xbf16>
    %c0_3 = arith.constant 0 : index
    %c0_4 = arith.constant 0 : index
    %2 = vector.load %arg5[%c0_3, %c0_4] : memref<2x1152xbf16, #tpu.memory_space<vmem>>, vector<2x128xbf16>
    tpu.vector_store %arg5[%c0_3, %c0_4], %1 {strides = array<i32>} : memref<2x1152xbf16, #tpu.memory_space<vmem>>, vector<2x128xbf16>,
    %c0_5 = arith.constant 0 : index
    %c0_6 = arith.constant 0 : index
    %c1 = arith.constant 1 : index
    %c0_7 = arith.constant 0 : index
    %3 = vector.load %arg1[%c0_5, %c0_6, %c1, %c0_7] : memref<2x3x3x128xbf16, #tpu.memory_space<vmem>>, vector<2x1x1x128xbf16>
    %4 = vector.shape_cast %3 : vector<2x1x1x128xbf16> to vector<2x128xbf16>
    %c0_8 = arith.constant 0 : index
    %c128 = arith.constant 128 : index
    %5 = vector.load %arg5[%c0_8, %c128] : memref<2x1152xbf16, #tpu.memory_space<vmem>>, vector<2x128xbf16>
    tpu.vector_store %arg5[%c0_8, %c128], %4 {strides = array<i32>} : memref<2x1152xbf16, #tpu.memory_space<vmem>>, vector<2x128xbf16>,
    %c0_9 = arith.constant 0 : index
    %c0_10 = arith.constant 0 : index
    %c2 = arith.constant 2 : index
    %c0_11 = arith.constant 0 : index
    %6 = vector.load %arg1[%c0_9, %c0_10, %c2, %c0_11] : memref<2x3x3x128xbf16, #tpu.memory_space<vmem>>, vector<2x1x1x128xbf16>
    %7 = vector.shape_cast %6 : vector<2x1x1x128xbf16> to vector<2x128xbf16>
    %c0_12 = arith.constant 0 : index
    %c256 = arith.constant 256 : index
    %8 = vector.load %arg5[%c0_12, %c256] : memref<2x1152xbf16, #tpu.memory_space<vmem>>, vector<2x128xbf16>
    tpu.vector_store %arg5[%c0_12, %c256], %7 {strides = array<i32>} : memref<2x1152xbf16, #tpu.memory_space<vmem>>, vector<2x128xbf16>,
    %c0_13 = arith.constant 0 : index
    %c1_14 = arith.constant 1 : index
    %c0_15 = arith.constant 0 : index
    %c0_16 = arith.constant 0 : index
    %9 = vector.load %arg1[%c0_13, %c1_14, %c0_15, %c0_16] : memref<2x3x3x128xbf16, #tpu.memory_space<vmem>>, vector<2x1x1x128xbf16>
    %10 = vector.shape_cast %9 : vector<2x1x1x128xbf16> to vector<2x128xbf16>
    %c0_17 = arith.constant 0 : index
    %c384 = arith.constant 384 : index
    %11 = vector.load %arg5[%c0_17, %c384] : memref<2x1152xbf16, #tpu.memory_space<vmem>>, vector<2x128xbf16>
    tpu.vector_store %arg5[%c0_17, %c384], %10 {strides = array<i32>} : memref<2x1152xbf16, #tpu.memory_space<vmem>>, vector<2x128xbf16>,
    %c0_18 = arith.constant 0 : index
    %c1_19 = arith.constant 1 : index
    %c1_20 = arith.constant 1 : index
    %c0_21 = arith.constant 0 : index
    %12 = vector.load %arg1[%c0_18, %c1_19, %c1_20, %c0_21] : memref<2x3x3x128xbf16, #tpu.memory_space<vmem>>, vector<2x1x1x128xbf16>
    %13 = vector.shape_cast %12 : vector<2x1x1x128xbf16> to vector<2x128xbf16>
    %c0_22 = arith.constant 0 : index
    %c512 = arith.constant 512 : index
    %14 = vector.load %arg5[%c0_22, %c512] : memref<2x1152xbf16, #tpu.memory_space<vmem>>, vector<2x128xbf16>
    tpu.vector_store %arg5[%c0_22, %c512], %13 {strides = array<i32>} : memref<2x1152xbf16, #tpu.memory_space<vmem>>, vector<2x128xbf16>,
    %c0_23 = arith.constant 0 : index
    %c1_24 = arith.constant 1 : index
    %c2_25 = arith.constant 2 : index
    %c0_26 = arith.constant 0 : index
    %15 = vector.load %arg1[%c0_23, %c1_24, %c2_25, %c0_26] : memref<2x3x3x128xbf16, #tpu.memory_space<vmem>>, vector<2x1x1x128xbf16>
    %16 = vector.shape_cast %15 : vector<2x1x1x128xbf16> to vector<2x128xbf16>
    %c0_27 = arith.constant 0 : index
    %c640 = arith.constant 640 : index
    %17 = vector.load %arg5[%c0_27, %c640] : memref<2x1152xbf16, #tpu.memory_space<vmem>>, vector<2x128xbf16>
    tpu.vector_store %arg5[%c0_27, %c640], %16 {strides = array<i32>} : memref<2x1152xbf16, #tpu.memory_space<vmem>>, vector<2x128xbf16>,
    %c0_28 = arith.constant 0 : index
    %c2_29 = arith.constant 2 : index
    %c0_30 = arith.constant 0 : index
    %c0_31 = arith.constant 0 : index
    %18 = vector.load %arg1[%c0_28, %c2_29, %c0_30, %c0_31] : memref<2x3x3x128xbf16, #tpu.memory_space<vmem>>, vector<2x1x1x128xbf16>
    %19 = vector.shape_cast %18 : vector<2x1x1x128xbf16> to vector<2x128xbf16>
    %c0_32 = arith.constant 0 : index
    %c768 = arith.constant 768 : index
    %20 = vector.load %arg5[%c0_32, %c768] : memref<2x1152xbf16, #tpu.memory_space<vmem>>, vector<2x128xbf16>
    tpu.vector_store %arg5[%c0_32, %c768], %19 {strides = array<i32>} : memref<2x1152xbf16, #tpu.memory_space<vmem>>, vector<2x128xbf16>,
    %c0_33 = arith.constant 0 : index
    %c2_34 = arith.constant 2 : index
    %c1_35 = arith.constant 1 : index
    %c0_36 = arith.constant 0 : index
    %21 = vector.load %arg1[%c0_33, %c2_34, %c1_35, %c0_36] : memref<2x3x3x128xbf16, #tpu.memory_space<vmem>>, vector<2x1x1x128xbf16>
    %22 = vector.shape_cast %21 : vector<2x1x1x128xbf16> to vector<2x128xbf16>
    %c0_37 = arith.constant 0 : index
    %c896 = arith.constant 896 : index
    %23 = vector.load %arg5[%c0_37, %c896] : memref<2x1152xbf16, #tpu.memory_space<vmem>>, vector<2x128xbf16>
    tpu.vector_store %arg5[%c0_37, %c896], %22 {strides = array<i32>} : memref<2x1152xbf16, #tpu.memory_space<vmem>>, vector<2x128xbf16>,
    %c0_38 = arith.constant 0 : index
    %c2_39 = arith.constant 2 : index
    %c2_40 = arith.constant 2 : index
    %c0_41 = arith.constant 0 : index
    %24 = vector.load %arg1[%c0_38, %c2_39, %c2_40, %c0_41] : memref<2x3x3x128xbf16, #tpu.memory_space<vmem>>, vector<2x1x1x128xbf16>
    %25 = vector.shape_cast %24 : vector<2x1x1x128xbf16> to vector<2x128xbf16>
    %c0_42 = arith.constant 0 : index
    %c1024 = arith.constant 1024 : index
    %26 = vector.load %arg5[%c0_42, %c1024] : memref<2x1152xbf16, #tpu.memory_space<vmem>>, vector<2x128xbf16>
    tpu.vector_store %arg5[%c0_42, %c1024], %25 {strides = array<i32>} : memref<2x1152xbf16, #tpu.memory_space<vmem>>, vector<2x128xbf16>,
    %c0_43 = arith.constant 0 : index
    %c0_44 = arith.constant 0 : index
    %27 = vector.load %arg5[%c0_43, %c0_44] : memref<2x1152xbf16, #tpu.memory_space<vmem>>, vector<2x1152xbf16>
    %c0_45 = arith.constant 0 : index
    %c0_46 = arith.constant 0 : index
    %28 = vector.load %arg2[%c0_45, %c0_46] : memref<1152x128xbf16, #tpu.memory_space<vmem>>, vector<1152x128xbf16>
    %cst = arith.constant dense<0.000000e+00> : vector<2x128xf32>
    %29 = tpu.matmul %27, %28, %cst {dimension_numbers = #tpu.dot_dimension_numbers<[1], [0], [0], [1], [0, 0, 1, 1], [], []>} : vector<2x1152xbf16>, vector<1152x128xbf16>, vector<2x128xf32> -> vector<2x128xf32>
    %c0_47 = arith.constant 0 : index
    %c0_48 = arith.constant 0 : index
    %30 = vector.load %arg3[%c0_47, %c0_48] : memref<1x128xf32, #tpu.memory_space<vmem>>, vector<1x128xf32>
    %31 = vector.broadcast %30 : vector<1x128xf32> to vector<2x128xf32>
    %32 = arith.addf %29, %31 : vector<2x128xf32>
    %cst_49 = arith.constant 0.000000e+00 : f32
    %33 = vector.broadcast %cst_49 : f32 to vector<2x128xf32>
    %34 = arith.maximumf %32, %33 : vector<2x128xf32>
    %35 = arith.truncf %34 : vector<2x128xf32> to vector<2x128xbf16>
    %c0_50 = arith.constant 0 : index
    %c0_51 = arith.constant 0 : index
    %36 = vector.load %arg4[%c0_50, %c0_51] : memref<2x128xbf16, #tpu.memory_space<vmem>>, vector<2x128xbf16>
    tpu.vector_store %arg4[%c0_50, %c0_51], %35 {strides = array<i32>} : memref<2x128xbf16, #tpu.memory_space<vmem>>, vector<2x128xbf16>,
    return
  }
  func.func @transform_0(%arg0: i32) -> (i32, i32, i32, i32) {
    %c0_i32 = arith.constant 0 : i32
    %c0_i32_0 = arith.constant 0 : i32
    %c0_i32_1 = arith.constant 0 : i32
    %c0_i32_2 = arith.constant 0 : i32
    return %arg0, %c0_i32, %c0_i32_0, %c0_i32_1 : i32, i32, i32, i32
  }
  func.func @transform_1(%arg0: i32) -> (i32, i32) {
    %c0_i32 = arith.constant 0 : i32
    %c0_i32_0 = arith.constant 0 : i32
    %c0_i32_1 = arith.constant 0 : i32
    return %c0_i32, %c0_i32_0 : i32, i32
  }
  func.func @transform_2(%arg0: i32) -> (i32, i32) {
    %c0_i32 = arith.constant 0 : i32
    %c0_i32_0 = arith.constant 0 : i32
    %c0_i32_1 = arith.constant 0 : i32
    return %c0_i32, %c0_i32_0 : i32, i32
  }
  func.func @transform_3(%arg0: i32) -> (i32, i32) {
    %c0_i32 = arith.constant 0 : i32
    %c0_i32_0 = arith.constant 0 : i32
    return %arg0, %c0_i32 : i32, i32
  }
}

</mosaic_0001>

<bundles_post_ra>
// kernel: atari_dqn_forward.4
= control target key start
LH: loop header
LB: loop body
LE: loop exit
PB: predicated region body
PF: predicated region fallthrough
CT: control target
= control target key end

     0   :  { %vm80_vm0 = vsmask.f32 3328  ;;  %vm81_vm1 = vsmask.f32 7440  ;;  %s1384_s19 = smov 64   ;;  %vm31_vm3 = vcmask 519168   ;;  %s1992_s0 = inlined_call_operand.vmem [shape: bf16[2,9,9,64], index: 0, kind: input, shape index: {}]   ;;  %s1993_s1 = inlined_call_operand.vmem [shape: bf16[256,32], index: 1, kind: input, shape index: {}]   ;;  %s1994_s2 = inlined_call_operand.vmem [shape: f32[1,32], index: 2, kind: input, shape index: {}]   ;;  %s1995_s3 = inlined_call_operand.vmem [shape: bf16[128,32], index: 3, kind: output, shape index: {}]  }
   0x1   :  { %v64_v0 = vld [vmem:[%s1992_s0 + $0x48] sm:$0xf]  ;;  %v65_v1 = vld [vmem:[%s1992_s0 + $0x4c] sm:$0x1]  ;;  %v48_v5 = vld [vmem:[%s1992_s0] sm:$0xf] }
   0x2   :  { %v196_v2 = vshrl.u32 %v64_v0, 16  ;;  %v199_v3 = vshll.u32 %v64_v0, 16  ;;  %v205_v4 = vshll.u32 %v65_v1, 16  ;;  %v1348_v6 = vld [vmem:[%s1993_s1 + $0x78] sm:$0xff]   ;;  %v49_v7 = vld [vmem:[%s1992_s0 + $0x4] sm:$0x1]  ;;  %vm1437_vm2 = vmor %vm80_vm0, %vm81_vm1 }
   0x3   :  { %v84_v8 = vshrl.u32 %v48_v5, 16  ;;  %v87_v9 = vshll.u32 %v48_v5, 16  ;;  %v66_v10 = vld [vmem:[%s1992_s0 + $0x50] sm:$0xf]  ;;  %v93_v14 = vshll.u32 %v49_v7, 16  ;;  %1267 = vmatprep.subr.bf16.mxu0 %v1348_v6  ;;  %1331 = vmatprep.subr.bf16.mxu1 %v1348_v6  ;;  %v1349_v26 = vld [vmem:[%s1993_s1 + $0x38] sm:$0xff]  }
   0x4   :  { %v198_v11 = vrot.slane %v196_v2, 4  ;;  %v201_v12 = vrot.slane %v199_v3, 5  ;;  %v207_v13 = vrot.slane %v205_v4, 5  ;;  %v67_v15 = vld [vmem:[%s1992_s0 + $0x54] sm:$0x1]  ;;  %v210_v18 = vshrl.u32 %v66_v10, 16  ;;  %1268 = vmatpush3.bf16.msra.mxu0 %v1349_v26  ;;  %1339 = vmatpush3.bf16.msra.mxu1 %v1349_v26 }
   0x5   :  { %v86_v16 = vrot.slane %v84_v8, 4  ;;  %v89_v17 = vrot.slane %v87_v9, 5  ;;  %v213_v19 = vshll.u32 %v66_v10, 16  ;;  %v50_v20 = vld [vmem:[%s1992_s0 + $0x8] sm:$0xf]  ;;  %v95_v22 = vrot.slane %v93_v14, 5 }
   0x6   :  { %v202_v21 = vor.u32 %v201_v12, %v198_v11  ;;  %v219_v23 = vshll.u32 %v67_v15, 16  ;;  %v51_v24 = vld [vmem:[%s1992_s0 + $0xc] sm:$0x1]  ;;  %v98_v25 = vshrl.u32 %v50_v20, 16  ;;  %v212_v29 = vrot.slane %v210_v18, 4  ;;  %v1350_v33 = vld [vmem:[%s1993_s1 + $0x70] sm:$0xff]  }
   0x7   :  { %v90_v28 = vor.u32 %v89_v17, %v86_v16  ;;  %v215_v30 = vrot.slane %v213_v19, 5  ;;  %v101_v31 = vshll.u32 %v50_v20, 16  ;;  %v1172_v32 = vld [vmem:[%s1992_s0 + $0x10] sm:$0xf]  ;;  %v107_v37 = vshll.u32 %v51_v24, 16  ;;  %1269 = vmatprep.subr.bf16.mxu0 %v1350_v33  ;;  %1332 = vmatprep.subr.bf16.mxu1 %v1350_v33  ;;  %v1352_v50 = vld [vmem:[%s1993_s1 + $0x68] sm:$0xff]  }
   0x8   :  { %v203_v34 = vrot.slane %v202_v21, 4  ;;  %v221_v35 = vrot.slane %v219_v23, 5  ;;  %v100_v36 = vrot.slane %v98_v25, 4  ;;  %v1173_v38 = vld [vmem:[%s1992_s0 + $0x14] sm:$0x1]  ;;  %v452_v42 = vshrl.u32 %v1172_v32, 16 }
   0x9   :  { %v91_v39 = vrot.slane %v90_v28, 4  ;;  %v216_v40 = vor.u32 %v215_v30, %v212_v29  ;;  %v103_v41 = vrot.slane %v101_v31, 5  ;;  %v1170_v43 = vld [vmem:[%s1992_s0 + $0x8] sm:$0xf]  ;;  %v1351_v44 = vld [vmem:[%s1993_s1 + $0x30] sm:$0xff]   ;;  %v109_v46 = vrot.slane %v107_v37, 5 }
   0xa   :  { %v208_v45 = vsel %vm1437_vm2, %v203_v34, %v207_v13  ;;  %v455_v47 = vshll.u32 %v1172_v32, 16  ;;  %v461_v48 = vshll.u32 %v1173_v38, 16  ;;  %v1171_v49 = vld [vmem:[%s1992_s0 + $0xc] sm:$0x1]  ;;  %v454_v54 = vrot.slane %v452_v42, 4  ;;  %1270 = vmatpush3.bf16.msra.mxu0 %v1351_v44  ;;  %1340 = vmatpush3.bf16.msra.mxu1 %v1351_v44  ;;  %v1354_v9 = vld [vmem:[%s1993_s1 + $0x60] sm:$0xff]  }
   0xb   :  { %323 = vrot.lane.b32.xlu1 %v208_v45, %s1384_s19  ;;  %v96_v51 = vsel %vm1437_vm2, %v91_v39, %v95_v22  ;;  %v217_v52 = vrot.slane %v216_v40, 4  ;;  %v104_v53 = vor.u32 %v103_v41, %v100_v36  ;;  %v1188_v55 = vld [vmem:[%s1992_s0 + $0x58] sm:$0xf]  ;;  %v1189_v56 = vld [vmem:[%s1992_s0 + $0x5c] sm:$0x1]  ;;  %v438_v59 = vshrl.u32 %v1170_v43, 16  ;;  %1271 = vmatprep.subr.bf16.mxu0 %v1352_v50 }
   0xc   :  { %307 = vrot.lane.b32.xlu0 %v96_v51, %s1384_s19  ;;  %v457_v57 = vrot.slane %v455_v47, 5  ;;  %v463_v58 = vrot.slane %v461_v48, 5  ;;  %v441_v60 = vshll.u32 %v1170_v43, 16  ;;  %v1186_v61 = vld [vmem:[%s1992_s0 + $0x50] sm:$0xf]  ;;  %v447_v0 = vshll.u32 %v1171_v49, 16  ;;  %1333 = vmatprep.subr.bf16.mxu1 %v1352_v50 }
   0xd   :  { %v222_v62 = vsel %vm1437_vm2, %v217_v52, %v221_v35  ;;  %v105_v63 = vrot.slane %v104_v53, 4  ;;  %v564_v1 = vshrl.u32 %v1188_v55, 16  ;;  %v1187_v2 = vld [vmem:[%s1992_s0 + $0x54] sm:$0x1]  ;;  %v1353_v3 = vld [vmem:[%s1993_s1 + $0x28] sm:$0xff]   ;;  %v440_v5 = vrot.slane %v438_v59, 4 }
   0xe   :  { %v458_v4 = vor.u32 %v457_v57, %v454_v54  ;;  %v443_v6 = vrot.slane %v441_v60, 5  ;;  %v567_v7 = vshll.u32 %v1188_v55, 16  ;;  %v54_v8 = vld [vmem:[%s1992_s0 + $0x18] sm:$0xf]  ;;  %v449_v11 = vrot.slane %v447_v0, 5  ;;  %1272 = vmatpush3.bf16.msra.mxu0 %v1353_v3  ;;  %v1355_v20 = vld [vmem:[%s1993_s1 + $0x20] sm:$0xff]   ;;  %1341 = vmatpush3.bf16.msra.mxu1 %v1353_v3 }
   0xf   :  { %325 = vrot.lane.b32.xlu1 %v222_v62, %s1384_s19  ;;  %v110_v10 = vsel %vm1437_vm2, %v105_v63, %v109_v46  ;;  %v566_v12 = vrot.slane %v564_v1, 4  ;;  %v573_v13 = vshll.u32 %v1189_v56, 16  ;;  %v55_v14 = vld [vmem:[%s1992_s0 + $0x1c] sm:$0x1]  ;;  %v550_v18 = vshrl.u32 %v1186_v61, 16  ;;  %1273 = vmatprep.subr.bf16.mxu0 %v1354_v9  ;;  %v1358_v48 = vld [vmem:[%s1993_s1 + $0x50] sm:$0xff]  }
  0x10   :  { %309 = vrot.lane.b32.xlu0 %v110_v10, %s1384_s19  ;;  %v459_v15 = vrot.slane %v458_v4, 4  ;;  %v444_v16 = vor.u32 %v443_v6, %v440_v5  ;;  %v569_v17 = vrot.slane %v567_v7, 5  ;;  %v52_v19 = vld [vmem:[%s1992_s0 + $0x10] sm:$0xf]  ;;  %v553_v22 = vshll.u32 %v1186_v61, 16  ;;  %v1356_v25 = vld [vmem:[%s1993_s1 + $0x58] sm:$0xff]   ;;  %1334 = vmatprep.subr.bf16.mxu1 %v1354_v9 }
  0x11   :  { %v575_v21 = vrot.slane %v573_v13, 5  ;;  %v559_v23 = vshll.u32 %v1187_v2, 16  ;;  %v126_v24 = vshrl.u32 %v54_v8, 16  ;;  %v552_v30 = vrot.slane %v550_v18, 4  ;;  %v53_v31 = vld [vmem:[%s1992_s0 + $0x14] sm:$0x1] }
  0x12   :  { %v464_v26 = vsel %vm1437_vm2, %v459_v15, %v463_v58  ;;  %v445_v28 = vrot.slane %v444_v16, 4  ;;  %v570_v29 = vor.u32 %v569_v17, %v566_v12  ;;  %v555_v32 = vrot.slane %v553_v22, 5  ;;  %v70_v36 = vld [vmem:[%s1992_s0 + $0x60] sm:$0xf]  ;;  %v71_v41 = vld [vmem:[%s1992_s0 + $0x64] sm:$0x1]  ;;  %1274 = vmatpush3.bf16.msra.mxu0 %v1355_v20  ;;  %1342 = vmatpush3.bf16.msra.mxu1 %v1355_v20 }
  0x13   :  { %663 = vrot.lane.b32.xlu1 %v464_v26, %s1384_s19  ;;  %v561_v33 = vrot.slane %v559_v23, 5  ;;  %v128_v34 = vrot.slane %v126_v24, 4  ;;  %v129_v35 = vshll.u32 %v54_v8, 16  ;;  %v135_v39 = vshll.u32 %v55_v14, 16  ;;  %v1357_v42 = vld [vmem:[%s1993_s1 + $0x18] sm:$0xff]   ;;  %1275 = vmatprep.subr.bf16.mxu0 %v1356_v25  ;;  %v1359_v63 = vld [vmem:[%s1993_s1 + $0x10] sm:$0xff]  }
  0x14   :  { %v450_v37 = vsel %vm1437_vm2, %v445_v28, %v449_v11  ;;  %v571_v38 = vrot.slane %v570_v29, 4  ;;  %v112_v40 = vshrl.u32 %v52_v19, 16  ;;  %v556_v43 = vor.u32 %v555_v32, %v552_v30  ;;  %v68_v47 = vld [vmem:[%s1992_s0 + $0x58] sm:$0xf]  ;;  %v69_v53 = vld [vmem:[%s1992_s0 + $0x5c] sm:$0x1]  ;;  %1335 = vmatprep.subr.bf16.mxu1 %v1356_v25 }
  0x15   :  { %661 = vrot.lane.b32.xlu0 %v450_v37, %s1384_s19  ;;  %v131_v44 = vrot.slane %v129_v35, 5  ;;  %v115_v45 = vshll.u32 %v52_v19, 16  ;;  %v121_v46 = vshll.u32 %v53_v31, 16  ;;  %v137_v50 = vrot.slane %v135_v39, 5  ;;  %v1176_v58 = vld [vmem:[%s1992_s0 + $0x20] sm:$0xf] }
  0x16   :  { %v576_v49 = vsel %vm1437_vm2, %v571_v38, %v575_v21  ;;  %v114_v51 = vrot.slane %v112_v40, 4  ;;  %v238_v52 = vshrl.u32 %v70_v36, 16  ;;  %v557_v54 = vrot.slane %v556_v43, 4  ;;  %1276 = vmatpush3.bf16.msra.mxu0 %v1357_v42  ;;  %v1177_v4 = vld [vmem:[%s1992_s0 + $0x24] sm:$0x1]  ;;  %v1360_v5 = vld [vmem:[%s1993_s1 + $0x48] sm:$0xff]   ;;  %1343 = vmatpush3.bf16.msra.mxu1 %v1357_v42 }
  0x17   :  { %679 = vrot.lane.b32.xlu1 %v576_v49, %s1384_s19  ;;  %v132_v55 = vor.u32 %v131_v44, %v128_v34  ;;  %v117_v56 = vrot.slane %v115_v45, 5  ;;  %v123_v57 = vrot.slane %v121_v46, 5  ;;  %v241_v60 = vshll.u32 %v70_v36, 16  ;;  %1277 = vmatprep.subr.bf16.mxu0 %v1358_v48  ;;  %v1174_v10 = vld [vmem:[%s1992_s0 + $0x18] sm:$0xf]  ;;  %v1361_v21 = vld [vmem:[%s1993_s1 + $0x8] sm:$0xff]  }
  0x18   :  { %v240_v59 = vrot.slane %v238_v52, 4  ;;  %v247_v61 = vshll.u32 %v71_v41, 16  ;;  %v224_v62 = vshrl.u32 %v68_v47, 16  ;;  %v562_v0 = vsel %vm1437_vm2, %v557_v54, %v561_v33  ;;  %v1175_v15 = vld [vmem:[%s1992_s0 + $0x1c] sm:$0x1]  ;;  %1336 = vmatprep.subr.bf16.mxu1 %v1358_v48  ;;  %v1362_v26 = vld [vmem:[%s1993_s1 + $0x40] sm:$0xff]  }
  0x19   :  { %v133_v1 = vrot.slane %v132_v55, 4  ;;  %v118_v2 = vor.u32 %v117_v56, %v114_v51  ;;  %v227_v3 = vshll.u32 %v68_v47, 16  ;;  %677 = vrot.lane.b32.xlu0 %v562_v0, %s1384_s19  ;;  %v243_v6 = vrot.slane %v241_v60, 5  ;;  %v1192_v20 = vld [vmem:[%s1992_s0 + $0x68] sm:$0xf]  ;;  %v1363_v48 = vld [vmem:[%s1993_s1] sm:$0xff]  }
  0x1a   :  { %v249_v7 = vrot.slane %v247_v61, 5  ;;  %v226_v8 = vrot.slane %v224_v62, 4  ;;  %v233_v9 = vshll.u32 %v69_v53, 16  ;;  %v480_v14 = vshrl.u32 %v1176_v58, 16  ;;  %1278 = vmatpush3.bf16.msra.mxu0 %v1359_v63  ;;  %v1193_v32 = vld [vmem:[%s1992_s0 + $0x6c] sm:$0x1]  ;;  %1344 = vmatpush3.bf16.msra.mxu1 %v1359_v63 }
  0x1b   :  { %v138_v11 = vsel %vm1437_vm2, %v133_v1, %v137_v50  ;;  %v119_v12 = vrot.slane %v118_v2, 4  ;;  %v229_v13 = vrot.slane %v227_v3, 5  ;;  %v244_v16 = vor.u32 %v243_v6, %v240_v59  ;;  %1279 = vmatprep.subr.bf16.mxu0 %v1360_v5  ;;  %v1190_v37 = vld [vmem:[%s1992_s0 + $0x60] sm:$0xf]  ;;  %1337 = vmatprep.subr.bf16.mxu1 %v1360_v5  ;;  %v1191_v42 = vld [vmem:[%s1992_s0 + $0x64] sm:$0x1] }
  0x1c   :  { %313 = vrot.lane.b32.xlu1 %v138_v11, %s1384_s19  ;;  %v235_v17 = vrot.slane %v233_v9, 5  ;;  %v483_v18 = vshll.u32 %v1176_v58, 16  ;;  %v489_v19 = vshll.u32 %v1177_v4, 16  ;;  %v482_v24 = vrot.slane %v480_v14, 4  ;;  %v58_v43 = vld [vmem:[%s1992_s0 + $0x28] sm:$0xf] }
  0x1d   :  { %v124_v22 = vsel %vm1437_vm2, %v119_v12, %v123_v57  ;;  %v230_v23 = vor.u32 %v229_v13, %v226_v8  ;;  %v466_v25 = vshrl.u32 %v1174_v10, 16  ;;  %v245_v28 = vrot.slane %v244_v16, 4  ;;  %v59_v53 = vld [vmem:[%s1992_s0 + $0x2c] sm:$0x1]  ;;  %v56_v58 = vld [vmem:[%s1992_s0 + $0x20] sm:$0xf] }
  0x1e   :  { %311 = vrot.lane.b32.xlu0 %v124_v22, %s1384_s19  ;;  %v485_v29 = vrot.slane %v483_v18, 5  ;;  %v491_v30 = vrot.slane %v489_v19, 5  ;;  %v469_v31 = vshll.u32 %v1174_v10, 16  ;;  %v475_v35 = vshll.u32 %v1175_v15, 16  ;;  %1280 = vmatpush3.bf16.msra.mxu0 %v1361_v21  ;;  %v57_v63 = vld [vmem:[%s1992_s0 + $0x24] sm:$0x1] }
  0x1f   :  { %v231_v33 = vrot.slane %v230_v23, 4  ;;  %v468_v34 = vrot.slane %v466_v25, 4  ;;  %v592_v36 = vshrl.u32 %v1192_v20, 16  ;;  %v250_v38 = vsel %vm1437_vm2, %v245_v28, %v249_v7  ;;  %1281 = vmatprep.subr.bf16.mxu0 %v1362_v26  ;;  %1345 = vmatpush3.bf16.msra.mxu1 %v1361_v21  ;;  %v74_v4 = vld [vmem:[%s1992_s0 + $0x70] sm:$0xf] }
  0x20   :  { %v486_v39 = vor.u32 %v485_v29, %v482_v24  ;;  %v471_v40 = vrot.slane %v469_v31, 5  ;;  %v595_v41 = vshll.u32 %v1192_v20, 16  ;;  %329 = vrot.lane.b32.xlu1 %v250_v38, %s1384_s19  ;;  %v477_v45 = vrot.slane %v475_v35, 5  ;;  %1338 = vmatprep.subr.bf16.mxu1 %v1362_v26  ;;  %v75_v9 = vld [vmem:[%s1992_s0 + $0x74] sm:$0x1] }
  0x21   :  { %v236_v44 = vsel %vm1437_vm2, %v231_v33, %v235_v17  ;;  %v594_v46 = vrot.slane %v592_v36, 4  ;;  %v601_v47 = vshll.u32 %v1193_v32, 16  ;;  %v578_v52 = vshrl.u32 %v1190_v37, 16  ;;  %v72_v14 = vld [vmem:[%s1992_s0 + $0x68] sm:$0xf] }
  0x22   :  { %327 = vrot.lane.b32.xlu0 %v236_v44, %s1384_s19  ;;  %v487_v49 = vrot.slane %v486_v39, 4  ;;  %v472_v50 = vor.u32 %v471_v40, %v468_v34  ;;  %v597_v51 = vrot.slane %v595_v41, 5  ;;  %v581_v55 = vshll.u32 %v1190_v37, 16  ;;  %1282 = vmatpush3.bf16.msra.mxu0 %v1363_v48  ;;  %v73_v23 = vld [vmem:[%s1992_s0 + $0x6c] sm:$0x1] }
  0x23   :  { %v603_v54 = vrot.slane %v601_v47, 5  ;;  %v587_v56 = vshll.u32 %v1191_v42, 16  ;;  %v154_v57 = vshrl.u32 %v58_v43, 16  ;;  %v580_v62 = vrot.slane %v578_v52, 4  ;;  %1346 = vmatpush3.bf16.msra.mxu1 %v1363_v48  ;;  %v1180_v29 = vld [vmem:[%s1992_s0 + $0x30] sm:$0xf] }
  0x24   :  { %v492_v59 = vsel %vm1437_vm2, %v487_v49, %v491_v30  ;;  %v473_v60 = vrot.slane %v472_v50, 4  ;;  %v598_v61 = vor.u32 %v597_v51, %v594_v46  ;;  %v583_v0 = vrot.slane %v581_v55, 5  ;;  %v1181_v34 = vld [vmem:[%s1992_s0 + $0x34] sm:$0x1]  ;;  %v1178_v39 = vld [vmem:[%s1992_s0 + $0x28] sm:$0xf] }
  0x25   :  { %667 = vrot.lane.b32.xlu1 %v492_v59, %s1384_s19  ;;  %v589_v1 = vrot.slane %v587_v56, 5  ;;  %v156_v2 = vrot.slane %v154_v57, 4  ;;  %v157_v3 = vshll.u32 %v58_v43, 16  ;;  %v163_v7 = vshll.u32 %v59_v53, 16  ;;  %v1179_v44 = vld [vmem:[%s1992_s0 + $0x2c] sm:$0x1] }
  0x26   :  { %v478_v5 = vsel %vm1437_vm2, %v473_v60, %v477_v45  ;;  %v599_v6 = vrot.slane %v598_v61, 4  ;;  %v140_v8 = vshrl.u32 %v56_v58, 16  ;;  %v584_v10 = vor.u32 %v583_v0, %v580_v62  ;;  %v1196_v49 = vld [vmem:[%s1992_s0 + $0x78] sm:$0xf]  ;;  %v1157_v27 = vld [vmem:[%s1992_s0 + $0x20] sm:$0xf] }
  0x27   :  { %665 = vrot.lane.b32.xlu0 %v478_v5, %s1384_s19  ;;  %v159_v11 = vrot.slane %v157_v3, 5  ;;  %v143_v12 = vshll.u32 %v56_v58, 16  ;;  %v149_v13 = vshll.u32 %v57_v63, 16  ;;  %v165_v16 = vrot.slane %v163_v7, 5  ;;  %v1197_v58 = vld [vmem:[%s1992_s0 + $0x7c] sm:$0x1] }
  0x28   :  { %v604_v15 = vsel %vm1437_vm2, %v599_v6, %v603_v54  ;;  %v142_v17 = vrot.slane %v140_v8, 4  ;;  %v266_v18 = vshrl.u32 %v74_v4, 16  ;;  %v585_v19 = vrot.slane %v584_v10, 4  ;;  %v1194_v63 = vld [vmem:[%s1992_s0 + $0x70] sm:$0xf] }
  0x29   :  { %683 = vrot.lane.b32.xlu1 %v604_v15, %s1384_s19  ;;  %v160_v20 = vor.u32 %v159_v11, %v156_v2  ;;  %v145_v21 = vrot.slane %v143_v12, 5  ;;  %v151_v22 = vrot.slane %v149_v13, 5  ;;  %v269_v25 = vshll.u32 %v74_v4, 16  ;;  %v1195_v4 = vld [vmem:[%s1992_s0 + $0x74] sm:$0x1] }
  0x2a   :  { %v268_v24 = vrot.slane %v266_v18, 4  ;;  %v275_v26 = vshll.u32 %v75_v9, 16  ;;  %v252_v28 = vshrl.u32 %v72_v14, 16  ;;  %v590_v30 = vsel %vm1437_vm2, %v585_v19, %v589_v1  ;;  %v62_v5 = vld [vmem:[%s1992_s0 + $0x38] sm:$0xf] }
  0x2b   :  { %v161_v31 = vrot.slane %v160_v20, 4  ;;  %v146_v32 = vor.u32 %v145_v21, %v142_v17  ;;  %v255_v33 = vshll.u32 %v72_v14, 16  ;;  %681 = vrot.lane.b32.xlu0 %v590_v30, %s1384_s19  ;;  %v271_v35 = vrot.slane %v269_v25, 5  ;;  %v63_v10 = vld [vmem:[%s1992_s0 + $0x3c] sm:$0x1] }
  0x2c   :  { %v277_v36 = vrot.slane %v275_v26, 5  ;;  %v254_v37 = vrot.slane %v252_v28, 4  ;;  %v261_v38 = vshll.u32 %v73_v23, 16  ;;  %v508_v43 = vshrl.u32 %v1180_v29, 16  ;;  %v60_v11 = vld [vmem:[%s1992_s0 + $0x30] sm:$0xf] }
  0x2d   :  { %v166_v40 = vsel %vm1437_vm2, %v161_v31, %v165_v16  ;;  %v147_v41 = vrot.slane %v146_v32, 4  ;;  %v257_v42 = vrot.slane %v255_v33, 5  ;;  %v272_v45 = vor.u32 %v271_v35, %v268_v24  ;;  %v61_v16 = vld [vmem:[%s1992_s0 + $0x34] sm:$0x1]  ;;  %v78_v21 = vld [vmem:[%s1992_s0 + $0x80] sm:$0xf] }
  0x2e   :  { %317 = vrot.lane.b32.xlu1 %v166_v40, %s1384_s19  ;;  %v263_v46 = vrot.slane %v261_v38, 5  ;;  %v511_v47 = vshll.u32 %v1180_v29, 16  ;;  %v517_v48 = vshll.u32 %v1181_v34, 16  ;;  %v510_v52 = vrot.slane %v508_v43, 4  ;;  %v79_v31 = vld [vmem:[%s1992_s0 + $0x84] sm:$0x1] }
  0x2f   :  { %v152_v50 = vsel %vm1437_vm2, %v147_v41, %v151_v22  ;;  %v258_v51 = vor.u32 %v257_v42, %v254_v37  ;;  %v494_v53 = vshrl.u32 %v1178_v39, 16  ;;  %v273_v54 = vrot.slane %v272_v45, 4  ;;  %v76_v32 = vld [vmem:[%s1992_s0 + $0x78] sm:$0xf]  ;;  %v77_v41 = vld [vmem:[%s1992_s0 + $0x7c] sm:$0x1] }
  0x30   :  { %315 = vrot.lane.b32.xlu0 %v152_v50, %s1384_s19  ;;  %v513_v55 = vrot.slane %v511_v47, 5  ;;  %v519_v56 = vrot.slane %v517_v48, 5  ;;  %v497_v57 = vshll.u32 %v1178_v39, 16  ;;  %v503_v61 = vshll.u32 %v1179_v44, 16  ;;  %392 = vst.msk [vmem:[#allocation2 + $0x1c] sm:$0xf] %vm31_vm3, %v1157_v27 }
  0x31   :  { %v259_v59 = vrot.slane %v258_v51, 4  ;;  %v496_v60 = vrot.slane %v494_v53, 4  ;;  %v620_v62 = vshrl.u32 %v1196_v49, 16  ;;  %v278_v0 = vsel %vm1437_vm2, %v273_v54, %v277_v36  ;;  %v1185_v51 = vld [vmem:[%s1992_s0 + $0x44] sm:$0x1] }
  0x32   :  { %v514_v1 = vor.u32 %v513_v55, %v510_v52  ;;  %v499_v2 = vrot.slane %v497_v57, 5  ;;  %v623_v3 = vshll.u32 %v1196_v49, 16  ;;  %333 = vrot.lane.b32.xlu1 %v278_v0, %s1384_s19  ;;  %v505_v7 = vrot.slane %v503_v61, 5 }
  0x33   :  { %v264_v6 = vsel %vm1437_vm2, %v259_v59, %v263_v46  ;;  %v622_v8 = vrot.slane %v620_v62, 4  ;;  %v629_v9 = vshll.u32 %v1197_v58, 16  ;;  %v606_v15 = vshrl.u32 %v1194_v63, 16  ;;  %v1184_v46 = vld [vmem:[%s1992_s0 + $0x40] sm:$0xf] }
  0x34   :  { %331 = vrot.lane.b32.xlu0 %v264_v6, %s1384_s19  ;;  %v515_v12 = vrot.slane %v514_v1, 4  ;;  %v500_v13 = vor.u32 %v499_v2, %v496_v60  ;;  %v625_v14 = vrot.slane %v623_v3, 5  ;;  %v609_v18 = vshll.u32 %v1194_v63, 16  ;;  %v1183_v1 = vld [vmem:[%s1992_s0 + $0x3c] sm:$0x1] }
  0x35   :  { %v631_v17 = vrot.slane %v629_v9, 5  ;;  %v615_v19 = vshll.u32 %v1195_v4, 16  ;;  %v182_v20 = vshrl.u32 %v62_v5, 16  ;;  %v608_v25 = vrot.slane %v606_v15, 4  ;;  %v1200_v2 = vld [vmem:[%s1992_s0 + $0x88] sm:$0xf] }
  0x36   :  { %v520_v22 = vsel %vm1437_vm2, %v515_v12, %v519_v56  ;;  %v501_v23 = vrot.slane %v500_v13, 4  ;;  %v626_v24 = vor.u32 %v625_v14, %v622_v8  ;;  %v611_v26 = vrot.slane %v609_v18, 5  ;;  %v1182_v56 = vld [vmem:[%s1992_s0 + $0x38] sm:$0xf] }
  0x37   :  { %671 = vrot.lane.b32.xlu1 %v520_v22, %s1384_s19  ;;  %v617_v28 = vrot.slane %v615_v19, 5  ;;  %v184_v29 = vrot.slane %v182_v20, 4  ;;  %v185_v30 = vshll.u32 %v62_v5, 16  ;;  %v191_v35 = vshll.u32 %v63_v10, 16  ;;  %v1199_v22 = vld [vmem:[%s1992_s0 + $0x84] sm:$0x1] }
  0x38   :  { %v506_v33 = vsel %vm1437_vm2, %v501_v23, %v505_v7  ;;  %v627_v34 = vrot.slane %v626_v24, 4  ;;  %v168_v36 = vshrl.u32 %v60_v11, 16  ;;  %v612_v37 = vor.u32 %v611_v26, %v608_v25  ;;  %v15_v23 = vld [vmem:[%s1992_s0] sm:$0xf] }
  0x39   :  { %669 = vrot.lane.b32.xlu0 %v506_v33, %s1384_s19  ;;  %v187_v38 = vrot.slane %v185_v30, 5  ;;  %v171_v39 = vshll.u32 %v60_v11, 16  ;;  %v177_v40 = vshll.u32 %v61_v16, 16  ;;  %v193_v43 = vrot.slane %v191_v35, 5  ;;  %v1201_v11 = vld [vmem:[%s1992_s0 + $0x8c] sm:$0x1] }
  0x3a   :  { %v632_v42 = vsel %vm1437_vm2, %v627_v34, %v631_v17  ;;  %v170_v44 = vrot.slane %v168_v36, 4  ;;  %v294_v45 = vshrl.u32 %v78_v21, 16  ;;  %v613_v47 = vrot.slane %v612_v37, 4  ;;  %v1198_v16 = vld [vmem:[%s1992_s0 + $0x80] sm:$0xf] }
  0x3b   :  { %687 = vrot.lane.b32.xlu1 %v632_v42, %s1384_s19  ;;  %v188_v48 = vor.u32 %v187_v38, %v184_v29  ;;  %v173_v49 = vrot.slane %v171_v39, 5  ;;  %v179_v50 = vrot.slane %v177_v40, 5  ;;  %v297_v53 = vshll.u32 %v78_v21, 16  ;;  %v23_v17 = vld [vmem:[%s1992_s0 + $0x48] sm:$0xf] }
  0x3c   :  { %v296_v52 = vrot.slane %v294_v45, 4  ;;  %v303_v54 = vshll.u32 %v79_v31, 16  ;;  %v280_v55 = vshrl.u32 %v76_v32, 16  ;;  %v618_v57 = vsel %vm1437_vm2, %v613_v47, %v617_v28  ;;  %40 = vst.msk [vmem:[#allocation2 + $0x40] sm:$0xf] %vm31_vm3, %v23_v17 }
  0x3d   :  { %v189_v58 = vrot.slane %v188_v48, 4  ;;  %v174_v59 = vor.u32 %v173_v49, %v170_v44  ;;  %v283_v60 = vshll.u32 %v76_v32, 16  ;;  %685 = vrot.lane.b32.xlu0 %v618_v57, %s1384_s19  ;;  %v299_v61 = vrot.slane %v297_v53, 5  ;;  %32 = vst.msk [vmem:[#allocation2] sm:$0xf] %vm31_vm3, %v15_v23 }
  0x3e   :  { %v305_v62 = vrot.slane %v303_v54, 5  ;;  %v282_v63 = vrot.slane %v280_v55, 4  ;;  %v289_v0 = vshll.u32 %v77_v41, 16  ;;  %v536_v6 = vshrl.u32 %v1184_v46, 16  ;;  %v24_v41 = vld [vmem:[%s1992_s0 + $0x50] sm:$0xf] }
  0x3f   :  { %v194_v3 = vsel %vm1437_vm2, %v189_v58, %v193_v43  ;;  %v175_v4 = vrot.slane %v174_v59, 4  ;;  %v285_v5 = vrot.slane %v283_v60, 5  ;;  %v300_v7 = vor.u32 %v299_v61, %v296_v52  ;;  %41 = vst.msk [vmem:[#allocation2 + $0x48] sm:$0xf] %vm31_vm3, %v24_v41  ;;  %v16_v45 = vld [vmem:[%s1992_s0 + $0x8] sm:$0xf] }
  0x40   :  { %321 = vrot.lane.b32.xlu1 %v194_v3, %s1384_s19  ;;  %v291_v8 = vrot.slane %v289_v0, 5  ;;  %v539_v9 = vshll.u32 %v1184_v46, 16  ;;  %v545_v10 = vshll.u32 %v1185_v51, 16  ;;  %v538_v14 = vrot.slane %v536_v6, 4  ;;  %33 = vst.msk [vmem:[#allocation2 + $0x8] sm:$0xf] %vm31_vm3, %v16_v45 }
  0x41   :  { %v180_v12 = vsel %vm1437_vm2, %v175_v4, %v179_v50  ;;  %v286_v13 = vor.u32 %v285_v5, %v282_v63  ;;  %v522_v15 = vshrl.u32 %v1182_v56, 16  ;;  %v301_v18 = vrot.slane %v300_v7, 4  ;;  %v1155_v54 = vld [vmem:[%s1992_s0 + $0x10] sm:$0xf]  ;;  %v1154_v55 = vld [vmem:[%s1992_s0 + $0x8] sm:$0xf] }
  0x42   :  { %319 = vrot.lane.b32.xlu0 %v180_v12, %s1384_s19  ;;  %v541_v19 = vrot.slane %v539_v9, 5  ;;  %v547_v20 = vrot.slane %v545_v10, 5  ;;  %v525_v21 = vshll.u32 %v1182_v56, 16  ;;  %v531_v26 = vshll.u32 %v1183_v1, 16  ;;  %390 = vst.msk [vmem:[#allocation2 + $0xc] sm:$0xf] %vm31_vm3, %v1155_v54 }
  0x43   :  { %v287_v24 = vrot.slane %v286_v13, 4  ;;  %v524_v25 = vrot.slane %v522_v15, 4  ;;  %v648_v28 = vshrl.u32 %v1200_v2, 16  ;;  %v306_v29 = vsel %vm1437_vm2, %v301_v18, %v305_v62  ;;  %389 = vst.msk [vmem:[#allocation2 + $0x4] sm:$0xf] %vm31_vm3, %v1154_v55 }
  0x44   :  { %v542_v30 = vor.u32 %v541_v19, %v538_v14  ;;  %v527_v31 = vrot.slane %v525_v21, 5  ;;  %v651_v32 = vshll.u32 %v1200_v2, 16  ;;  %337 = vrot.lane.b32.xlu1 %v306_v29, %s1384_s19  ;;  %v533_v34 = vrot.slane %v531_v26, 5  ;;  %v1163_v58 = vld [vmem:[%s1992_s0 + $0x58] sm:$0xf] }
  0x45   :  { %v292_v33 = vsel %vm1437_vm2, %v287_v24, %v291_v8  ;;  %v650_v35 = vrot.slane %v648_v28, 4  ;;  %v657_v36 = vshll.u32 %v1201_v11, 16  ;;  %v634_v40 = vshrl.u32 %v1198_v16, 16  ;;  %v1162_v59 = vld [vmem:[%s1992_s0 + $0x50] sm:$0xf] }
  0x46   :  { %335 = vrot.lane.b32.xlu0 %v292_v33, %s1384_s19  ;;  %v543_v37 = vrot.slane %v542_v30, 4  ;;  %v528_v38 = vor.u32 %v527_v31, %v524_v25  ;;  %v653_v39 = vrot.slane %v651_v32, 5  ;;  %v637_v43 = vshll.u32 %v1198_v16, 16  ;;  %398 = vst.msk [vmem:[#allocation2 + $0x4c] sm:$0xf] %vm31_vm3, %v1163_v58 }
  0x47   :  { %v659_v42 = vrot.slane %v657_v36, 5  ;;  %v643_v44 = vshll.u32 %v1199_v22, 16  ;;  %v636_v49 = vrot.slane %v634_v40, 4  ;;  %397 = vst.msk [vmem:[#allocation2 + $0x44] sm:$0xf] %vm31_vm3, %v1162_v59  ;;  %vm355_vm4 = vcmask 1043968  }
  0x48   :  { %v548_v46 = vsel %vm1437_vm2, %v543_v37, %v547_v20  ;;  %v529_v47 = vrot.slane %v528_v38, 4  ;;  %v654_v48 = vor.u32 %v653_v39, %v650_v35  ;;  %v639_v50 = vrot.slane %v637_v43, 5  ;;  %v18_v61 = vld [vmem:[%s1992_s0 + $0x18] sm:$0xf]  ;;  %v17_v63 = vld [vmem:[%s1992_s0 + $0x10] sm:$0xf] }
  0x49   :  { %675 = vrot.lane.b32.xlu1 %v548_v46, %s1384_s19  ;;  %v645_v53 = vrot.slane %v643_v44, 5  ;;  %35 = vst.msk [vmem:[#allocation2 + $0x18] sm:$0xf] %vm31_vm3, %v18_v61  ;;  %34 = vst.msk [vmem:[#allocation2 + $0x10] sm:$0xf] %vm31_vm3, %v17_v63  ;;  %vm1133_vm5 = vcmask 257024  }
  0x4a   :  { %v534_v51 = vsel %vm1437_vm2, %v529_v47, %v533_v34  ;;  %v655_v52 = vrot.slane %v654_v48, 4  ;;  %v640_v56 = vor.u32 %v639_v50, %v636_v49  ;;  %v26_v0 = vld [vmem:[%s1992_s0 + $0x60] sm:$0xf]  ;;  %v25_v1 = vld [vmem:[%s1992_s0 + $0x58] sm:$0xf] }
  0x4b   :  { %673 = vrot.lane.b32.xlu0 %v534_v51, %s1384_s19  ;;  %43 = vst.msk [vmem:[#allocation2 + $0x58] sm:$0xf] %vm31_vm3, %v26_v0  ;;  %42 = vst.msk [vmem:[#allocation2 + $0x50] sm:$0xf] %vm31_vm3, %v25_v1  ;;  %v1156_v2 = vld [vmem:[%s1992_s0 + $0x18] sm:$0xf] }
  0x4c   :  { %v660_v57 = vsel %vm1437_vm2, %v655_v52, %v659_v42  ;;  %v641_v60 = vrot.slane %v640_v56, 4  ;;  %v1165_v3 = vld [vmem:[%s1992_s0 + $0x68] sm:$0xf]  ;;  %v1164_v4 = vld [vmem:[%s1992_s0 + $0x60] sm:$0xf] }
  0x4d   :  { %691 = vrot.lane.b32.xlu1 %v660_v57, %s1384_s19  ;;  %391 = vst.msk [vmem:[#allocation2 + $0x14] sm:$0xf] %vm31_vm3, %v1156_v2  ;;  %400 = vst.msk [vmem:[#allocation2 + $0x5c] sm:$0xf] %vm31_vm3, %v1165_v3  ;;  %v20_v5 = vld [vmem:[%s1992_s0 + $0x28] sm:$0xf] }
  0x4e   :  { %v646_v62 = vsel %vm1437_vm2, %v641_v60, %v645_v53  ;;  %399 = vst.msk [vmem:[#allocation2 + $0x54] sm:$0xf] %vm31_vm3, %v1164_v4  ;;  %v19_v6 = vld [vmem:[%s1992_s0 + $0x20] sm:$0xf]  ;;  %v28_v7 = vld [vmem:[%s1992_s0 + $0x70] sm:$0xf] }
  0x4f   :  { %689 = vrot.lane.b32.xlu0 %v646_v62, %s1384_s19  ;;  %37 = vst.msk [vmem:[#allocation2 + $0x28] sm:$0xf] %vm31_vm3, %v20_v5  ;;  %36 = vst.msk [vmem:[#allocation2 + $0x20] sm:$0xf] %vm31_vm3, %v19_v6  ;;  %v27_v8 = vld [vmem:[%s1992_s0 + $0x68] sm:$0xf] }
  0x50   :  { %45 = vst.msk [vmem:[#allocation2 + $0x68] sm:$0xf] %vm31_vm3, %v28_v7  ;;  %v1159_v9 = vld [vmem:[%s1992_s0 + $0x30] sm:$0xf]  ;;  %v1158_v10 = vld [vmem:[%s1992_s0 + $0x28] sm:$0xf] }
  0x51   :  { %44 = vst.msk [vmem:[#allocation2 + $0x60] sm:$0xf] %vm31_vm3, %v27_v8  ;;  %394 = vst.msk [vmem:[#allocation2 + $0x2c] sm:$0xf] %vm31_vm3, %v1159_v9  ;;  %v1167_v11 = vld [vmem:[%s1992_s0 + $0x78] sm:$0xf] }
  0x52   :  { %393 = vst.msk [vmem:[#allocation2 + $0x24] sm:$0xf] %vm31_vm3, %v1158_v10  ;;  %v1166_v12 = vld [vmem:[%s1992_s0 + $0x70] sm:$0xf]  ;;  %v22_v13 = vld [vmem:[%s1992_s0 + $0x38] sm:$0xf] }
  0x53   :  { %402 = vst.msk [vmem:[#allocation2 + $0x6c] sm:$0xf] %vm31_vm3, %v1167_v11  ;;  %401 = vst.msk [vmem:[#allocation2 + $0x64] sm:$0xf] %vm31_vm3, %v1166_v12  ;;  %v21_v14 = vld [vmem:[%s1992_s0 + $0x30] sm:$0xf] }
  0x54   :  { %39 = vst.msk [vmem:[#allocation2 + $0x38] sm:$0xf] %vm31_vm3, %v22_v13  ;;  %v30_v15 = vld [vmem:[%s1992_s0 + $0x80] sm:$0xf]  ;;  %v29_v16 = vld [vmem:[%s1992_s0 + $0x78] sm:$0xf] }
  0x55   :  { %38 = vst.msk [vmem:[#allocation2 + $0x30] sm:$0xf] %vm31_vm3, %v21_v14  ;;  %47 = vst.msk [vmem:[#allocation2 + $0x78] sm:$0xf] %vm31_vm3, %v30_v15  ;;  %v1161_v17 = vld [vmem:[%s1992_s0 + $0x40] sm:$0xf] }
  0x56   :  { %46 = vst.msk [vmem:[#allocation2 + $0x70] sm:$0xf] %vm31_vm3, %v29_v16  ;;  %v1160_v18 = vld [vmem:[%s1992_s0 + $0x38] sm:$0xf]  ;;  %v1169_v19 = vld [vmem:[%s1992_s0 + $0x88] sm:$0xf] }
  0x57   :  { %396 = vst.msk [vmem:[#allocation2 + $0x3c] sm:$0xf] %vm31_vm3, %v1161_v17  ;;  %395 = vst.msk [vmem:[#allocation2 + $0x34] sm:$0xf] %vm31_vm3, %v1160_v18  ;;  %v1168_v20 = vld [vmem:[%s1992_s0 + $0x80] sm:$0xf] }
  0x58   :  { %404 = vst.msk [vmem:[#allocation2 + $0x7c] sm:$0xf] %vm31_vm3, %v1169_v19  ;;  %403 = vst.msk [vmem:[#allocation2 + $0x74] sm:$0xf] %vm31_vm3, %v1168_v20  ;;  %v1910_v14 = vld [vmem:[%s1994_s2] ss:$0 sm:$0xff] }
  0x7d   :  { %v324_v21 = vpop.permute.xlu1 %323 }
  0x7e   :  { %364 = vst.msk [vmem:[#allocation2 + $0x40] sm:$0xf] %vm355_vm4, %v324_v21  ;;  %v308_v22 = vpop.permute.xlu0 %307 }
  0x7f   :  { %356 = vst.msk [vmem:[#allocation2] sm:$0xf] %vm355_vm4, %v308_v22 }
  0x81   :  { %v326_v23 = vpop.permute.xlu1 %325 }
  0x82   :  { %365 = vst.msk [vmem:[#allocation2 + $0x48] sm:$0xf] %vm355_vm4, %v326_v23  ;;  %v310_v24 = vpop.permute.xlu0 %309 }
  0x83   :  { %357 = vst.msk [vmem:[#allocation2 + $0x8] sm:$0xf] %vm355_vm4, %v310_v24 }
  0x85   :  { %v664_v25 = vpop.permute.xlu1 %663 }
  0x86   :  { %710 = vst.msk [vmem:[#allocation2 + $0xc] sm:$0xf] %vm355_vm4, %v664_v25 }
  0x87   :  { %v662_v26 = vpop.permute.xlu0 %661 }
  0x88   :  { %709 = vst.msk [vmem:[#allocation2 + $0x4] sm:$0xf] %vm355_vm4, %v662_v26 }
  0x89   :  { %v680_v28 = vpop.permute.xlu1 %679  ;;  %v1367_v36 = vld [vmem:[#allocation2 + $0x40] ss:$8 sps:$4 sm:$0xff]  }
  0x8a   :  { %718 = vst.msk [vmem:[#allocation2 + $0x4c] sm:$0xf] %vm355_vm4, %v680_v28  ;;  %v1364_v31 = vld [vmem:[#allocation2] ss:$8 sps:$4 sm:$0xff]  }
  0x8b   :  { %v678_v29 = vpop.permute.xlu0 %677 }
  0x8c   :  { %717 = vst.msk [vmem:[#allocation2 + $0x44] sm:$0xf] %vm355_vm4, %v678_v29 }
  0x8e   :  { %v314_v30 = vpop.permute.xlu1 %313 }
  0x8f   :  { %359 = vst.msk [vmem:[#allocation2 + $0x18] sm:$0xf] %vm355_vm4, %v314_v30  ;;  %v1366_v32 = vld [vmem:[#allocation2 + $0x4] ss:$8 sps:$4 sm:$0xff]  }
  0x90   :  { %v312_v33 = vpop.permute.xlu0 %311  ;;  %988 = vmatprep.mubr.bf16.mxu0 %v1366_v32 }
  0x91   :  { %358 = vst.msk [vmem:[#allocation2 + $0x10] sm:$0xf] %vm355_vm4, %v312_v33  ;;  %989 = vmatmul.mubr.bf16.vlgmr.msra.gmra.mxu0 %v1364_v31 }
  0x92   :  { %v330_v34 = vpop.permute.xlu1 %329 }
  0x93   :  { %367 = vst.msk [vmem:[#allocation2 + $0x58] sm:$0xf] %vm355_vm4, %v330_v34  ;;  %v1369_v37 = vld [vmem:[#allocation2 + $0x44] ss:$8 sps:$4 sm:$0xff]  }
  0x94   :  { %v328_v35 = vpop.permute.xlu0 %327  ;;  %1020 = vmatprep.mubr.bf16.mxu1 %v1369_v37 }
  0x95   :  { %366 = vst.msk [vmem:[#allocation2 + $0x50] sm:$0xf] %vm355_vm4, %v328_v35  ;;  %1021 = vmatmul.mubr.bf16.vlgmr.msra.gmra.mxu1 %v1367_v36 }
  0x97   :  { %v668_v38 = vpop.permute.xlu1 %667 }
  0x98   :  { %712 = vst.msk [vmem:[#allocation2 + $0x1c] sm:$0xf] %vm355_vm4, %v668_v38 }
  0x99   :  { %v666_v39 = vpop.permute.xlu0 %665 }
  0x9a   :  { %711 = vst.msk [vmem:[#allocation2 + $0x14] sm:$0xf] %vm355_vm4, %v666_v39 }
  0x9b   :  { %v684_v40 = vpop.permute.xlu1 %683 }
  0x9c   :  { %720 = vst.msk [vmem:[#allocation2 + $0x5c] sm:$0xf] %vm355_vm4, %v684_v40 }
  0x9d   :  { %v682_v41 = vpop.permute.xlu0 %681 }
  0x9e   :  { %719 = vst.msk [vmem:[#allocation2 + $0x54] sm:$0xf] %vm355_vm4, %v682_v41 }
  0x9f   :  { %v728_v42 = vld [vmem:[#allocation2 + $0x18] sm:$0xff] }
  0xa0   :  { %v318_v43 = vpop.permute.xlu1 %317 }
  0xa1   :  { %361 = vst.msk [vmem:[#allocation2 + $0x28] sm:$0xf] %vm355_vm4, %v318_v43  ;;  %v727_v44 = vld [vmem:[#allocation2 + $0x10] sm:$0xff] }
  0xa2   :  { %v1370_v45 = vld [vmem:[#allocation2 + $0x14] ss:$8 sps:$4 sm:$0xff]   ;;  %v316_v46 = vpop.permute.xlu0 %315  ;;  %v1205_v47 = vcombine.low %v727_v44, %v728_v42 }
  0xa3   :  { %360 = vst.msk [vmem:[#allocation2 + $0x20] sm:$0xf] %vm355_vm4, %v316_v46  ;;  %996 = vmatprep.mubr.bf16.mxu0 %v1370_v45  ;;  %v736_v48 = vld [vmem:[#allocation2 + $0x58] sm:$0xff] }
  0xa4   :  { %997 = vmatmul.mubr.bf16.gmra.mxu0 %v1205_v47  ;;  %v334_v49 = vpop.permute.xlu1 %333 }
  0xa5   :  { %369 = vst.msk [vmem:[#allocation2 + $0x68] sm:$0xf] %vm355_vm4, %v334_v49  ;;  %v735_v51 = vld [vmem:[#allocation2 + $0x50] sm:$0xff] }
  0xa6   :  { %v332_v50 = vpop.permute.xlu0 %331  ;;  %v1372_v52 = vld [vmem:[#allocation2 + $0x54] ss:$8 sps:$4 sm:$0xff]   ;;  %v1213_v53 = vcombine.low %v735_v51, %v736_v48 }
  0xa7   :  { %368 = vst.msk [vmem:[#allocation2 + $0x60] sm:$0xf] %vm355_vm4, %v332_v50  ;;  %1028 = vmatprep.mubr.bf16.mxu1 %v1372_v52 }
  0xa8   :  { %1029 = vmatmul.mubr.bf16.gmra.mxu1 %v1213_v53 }
  0xa9   :  { %v672_v54 = vpop.permute.xlu1 %671 }
  0xaa   :  { %714 = vst.msk [vmem:[#allocation2 + $0x2c] sm:$0xf] %vm355_vm4, %v672_v54 }
  0xab   :  { %v670_v55 = vpop.permute.xlu0 %669 }
  0xac   :  { %713 = vst.msk [vmem:[#allocation2 + $0x24] sm:$0xf] %vm355_vm4, %v670_v55 }
  0xad   :  { %v688_v56 = vpop.permute.xlu1 %687 }
  0xae   :  { %722 = vst.msk [vmem:[#allocation2 + $0x6c] sm:$0xf] %vm355_vm4, %v688_v56 }
  0xaf   :  { %v686_v57 = vpop.permute.xlu0 %685 }
  0xb0   :  { %721 = vst.msk [vmem:[#allocation2 + $0x64] sm:$0xf] %vm355_vm4, %v686_v57 }
  0xb1   :  { %v730_v58 = vld [vmem:[#allocation2 + $0x28] sm:$0xff] }
  0xb2   :  { %v322_v59 = vpop.permute.xlu1 %321 }
  0xb3   :  { %363 = vst.msk [vmem:[#allocation2 + $0x38] sm:$0xf] %vm355_vm4, %v322_v59  ;;  %v729_v60 = vld [vmem:[#allocation2 + $0x20] sm:$0xff] }
  0xb4   :  { %v1374_v61 = vld [vmem:[#allocation2 + $0x24] ss:$8 sps:$4 sm:$0xff]   ;;  %v320_v62 = vpop.permute.xlu0 %319  ;;  %v1207_v63 = vcombine.low %v729_v60, %v730_v58 }
  0xb5   :  { %362 = vst.msk [vmem:[#allocation2 + $0x30] sm:$0xf] %vm355_vm4, %v320_v62  ;;  %1004 = vmatprep.mubr.bf16.mxu0 %v1374_v61  ;;  %v738_v0 = vld [vmem:[#allocation2 + $0x68] sm:$0xff] }
  0xb6   :  { %1005 = vmatmul.mubr.bf16.gmra.mxu0 %v1207_v63  ;;  %v338_v1 = vpop.permute.xlu1 %337 }
  0xb7   :  { %371 = vst.msk [vmem:[#allocation2 + $0x78] sm:$0xf] %vm355_vm4, %v338_v1  ;;  %v737_v2 = vld [vmem:[#allocation2 + $0x60] sm:$0xff] }
  0xb8   :  { %v336_v27 = vpop.permute.xlu0 %335  ;;  %v1376_v3 = vld [vmem:[#allocation2 + $0x64] ss:$8 sps:$4 sm:$0xff]   ;;  %v1215_v4 = vcombine.low %v737_v2, %v738_v0 }
  0xb9   :  { %370 = vst.msk [vmem:[#allocation2 + $0x70] sm:$0xf] %vm355_vm4, %v336_v27  ;;  %1036 = vmatprep.mubr.bf16.mxu1 %v1376_v3 }
  0xba   :  { %1037 = vmatmul.mubr.bf16.gmra.mxu1 %v1215_v4 }
  0xbb   :  { %v676_v5 = vpop.permute.xlu1 %675 }
  0xbc   :  { %716 = vst.msk [vmem:[#allocation2 + $0x3c] sm:$0xf] %vm355_vm4, %v676_v5  ;;  %v1380_v10 = vld [vmem:[#allocation2 + $0x30] ss:$8 sps:$4 sm:$0xff]  }
  0xbd   :  { %v674_v6 = vpop.permute.xlu0 %673 }
  0xbe   :  { %715 = vst.msk [vmem:[#allocation2 + $0x34] sm:$0xf] %vm355_vm4, %v674_v6 }
  0xbf   :  { %v692_v7 = vpop.permute.xlu1 %691 }
  0xc0   :  { %724 = vst.msk [vmem:[#allocation2 + $0x7c] sm:$0xf] %vm355_vm4, %v692_v7  ;;  %v1383_v12 = vld [vmem:[#allocation2 + $0x70] ss:$8 sps:$4 sm:$0xff]  }
  0xc1   :  { %v690_v8 = vpop.permute.xlu0 %689 }
  0xc2   :  { %723 = vst.msk [vmem:[#allocation2 + $0x74] sm:$0xf] %vm355_vm4, %v690_v8 }
  0xc5   :  { %v1378_v9 = vld [vmem:[#allocation2 + $0x34] ss:$8 sps:$4 sm:$0xff]  }
  0xc6   :  { %1012 = vmatprep.mubr.bf16.mxu0 %v1378_v9 }
  0xc7   :  { %1013 = vmatmul.mubr.bf16.gmra.mxu0 %v1380_v10 }
  0xc9   :  { %v1381_v11 = vld [vmem:[#allocation2 + $0x74] ss:$8 sps:$4 sm:$0xff]  }
  0xca   :  { %1044 = vmatprep.mubr.bf16.mxu1 %v1381_v11 }
  0xcb   :  { %1045 = vmatmul.mubr.bf16.gmra.mxu1 %v1383_v12 }
 0x151   :  { %v1283_v13 = vpop.f32.mrf.mxu0 }
 0x153   :  { %v1284_v15 = vpop.f32.mrf.mxu0 }
 0x154   :  { %v1285_v16 = vadd.f32 %v1284_v15, %v1283_v13 }
 0x155   :  { %v1286_v17 = vpop.f32.mrf.mxu0  ;;  %v1307_v19 = vpop.f32.mrf.mxu1 }
 0x156   :  { %v991_v18 = vadd.f32 %v1285_v16, %v1910_v14 }
 0x157   :  { %v1287_v20 = vpop.f32.mrf.mxu0  ;;  %v1308_v23 = vpop.f32.mrf.mxu1 }
 0x158   :  { %v1053_v21 = vmax.f32 %v991_v18, 0.0  ;;  %v1288_v22 = vadd.f32 %v1287_v20, %v1286_v17  ;;  %v1309_v24 = vadd.f32 %v1308_v23, %v1307_v19 }
 0x159   :  { %v1310_v28 = vpop.f32.mrf.mxu1 }
 0x15a   :  { %v1251_v25 = vpack.c.bf16 %v1053_v21, %v1053_v21  ;;  %v994_v26 = vadd.f32 %v1288_v22, %v1910_v14  ;;  %v1023_v29 = vadd.f32 %v1309_v24, %v1910_v14 }
 0x15b   :  { %v1311_v31 = vpop.f32.mrf.mxu1 }
 0x15c   :  { %1134 = vst.msk [vmem:[%s1995_s3] sm:$0xf] %vm1133_vm5, %v1251_v25  ;;  %v1054_v30 = vmax.f32 %v994_v26, 0.0  ;;  %v1061_v32 = vmax.f32 %v1023_v29, 0.0  ;;  %v1312_v33 = vadd.f32 %v1311_v31, %v1310_v28 }
 0x15e   :  { %v1252_v34 = vpack.c.bf16 %v1054_v30, %v1054_v30  ;;  %v1259_v35 = vpack.c.bf16 %v1061_v32, %v1061_v32  ;;  %v1026_v36 = vadd.f32 %v1312_v33, %v1910_v14 }
 0x160   :  { %1135 = vst.msk [vmem:[%s1995_s3 + $0x4] sm:$0xf] %vm1133_vm5, %v1252_v34  ;;  %1142 = vst.msk [vmem:[%s1995_s3 + $0x20] sm:$0xf] %vm1133_vm5, %v1259_v35  ;;  %v1062_v37 = vmax.f32 %v1026_v36, 0.0 }
 0x162   :  { %v1260_v38 = vpack.c.bf16 %v1062_v37, %v1062_v37 }
 0x164   :  { %v1289_v39 = vpop.f32.mrf.mxu0  ;;  %1143 = vst.msk [vmem:[%s1995_s3 + $0x24] sm:$0xf] %vm1133_vm5, %v1260_v38 }
 0x166   :  { %v1290_v40 = vpop.f32.mrf.mxu0 }
 0x167   :  { %v1291_v41 = vadd.f32 %v1290_v40, %v1289_v39 }
 0x168   :  { %v1292_v42 = vpop.f32.mrf.mxu0  ;;  %v1313_v44 = vpop.f32.mrf.mxu1 }
 0x169   :  { %v999_v43 = vadd.f32 %v1291_v41, %v1910_v14 }
 0x16a   :  { %v1293_v45 = vpop.f32.mrf.mxu0  ;;  %v1314_v48 = vpop.f32.mrf.mxu1 }
 0x16b   :  { %v1055_v46 = vmax.f32 %v999_v43, 0.0  ;;  %v1294_v47 = vadd.f32 %v1293_v45, %v1292_v42  ;;  %v1315_v49 = vadd.f32 %v1314_v48, %v1313_v44 }
 0x16c   :  { %v1316_v52 = vpop.f32.mrf.mxu1 }
 0x16d   :  { %v1253_v50 = vpack.c.bf16 %v1055_v46, %v1055_v46  ;;  %v1002_v51 = vadd.f32 %v1294_v47, %v1910_v14  ;;  %v1031_v53 = vadd.f32 %v1315_v49, %v1910_v14 }
 0x16e   :  { %v1317_v55 = vpop.f32.mrf.mxu1 }
 0x16f   :  { %1136 = vst.msk [vmem:[%s1995_s3 + $0x8] sm:$0xf] %vm1133_vm5, %v1253_v50  ;;  %v1056_v54 = vmax.f32 %v1002_v51, 0.0  ;;  %v1063_v56 = vmax.f32 %v1031_v53, 0.0  ;;  %v1318_v57 = vadd.f32 %v1317_v55, %v1316_v52 }
 0x171   :  { %v1254_v58 = vpack.c.bf16 %v1056_v54, %v1056_v54  ;;  %v1261_v59 = vpack.c.bf16 %v1063_v56, %v1063_v56  ;;  %v1034_v60 = vadd.f32 %v1318_v57, %v1910_v14 }
 0x173   :  { %1137 = vst.msk [vmem:[%s1995_s3 + $0xc] sm:$0xf] %vm1133_vm5, %v1254_v58  ;;  %1144 = vst.msk [vmem:[%s1995_s3 + $0x28] sm:$0xf] %vm1133_vm5, %v1261_v59  ;;  %v1064_v61 = vmax.f32 %v1034_v60, 0.0 }
 0x175   :  { %v1262_v62 = vpack.c.bf16 %v1064_v61, %v1064_v61 }
 0x176   :  { %v1295_v63 = vpop.f32.mrf.mxu0 }
 0x177   :  { %1145 = vst.msk [vmem:[%s1995_s3 + $0x2c] sm:$0xf] %vm1133_vm5, %v1262_v62 }
 0x178   :  { %v1296_v0 = vpop.f32.mrf.mxu0 }
 0x179   :  { %v1297_v1 = vadd.f32 %v1296_v0, %v1295_v63 }
 0x17a   :  { %v1298_v27 = vpop.f32.mrf.mxu0  ;;  %v1319_v3 = vpop.f32.mrf.mxu1 }
 0x17b   :  { %v1007_v2 = vadd.f32 %v1297_v1, %v1910_v14 }
 0x17c   :  { %v1299_v4 = vpop.f32.mrf.mxu0  ;;  %v1320_v7 = vpop.f32.mrf.mxu1 }
 0x17d   :  { %v1057_v5 = vmax.f32 %v1007_v2, 0.0  ;;  %v1300_v6 = vadd.f32 %v1299_v4, %v1298_v27  ;;  %v1321_v8 = vadd.f32 %v1320_v7, %v1319_v3 }
 0x17e   :  { %v1322_v11 = vpop.f32.mrf.mxu1 }
 0x17f   :  { %v1255_v9 = vpack.c.bf16 %v1057_v5, %v1057_v5  ;;  %v1010_v10 = vadd.f32 %v1300_v6, %v1910_v14  ;;  %v1039_v12 = vadd.f32 %v1321_v8, %v1910_v14 }
 0x180   :  { %v1323_v15 = vpop.f32.mrf.mxu1 }
 0x181   :  { %1138 = vst.msk [vmem:[%s1995_s3 + $0x10] sm:$0xf] %vm1133_vm5, %v1255_v9  ;;  %v1058_v13 = vmax.f32 %v1010_v10, 0.0  ;;  %v1065_v16 = vmax.f32 %v1039_v12, 0.0  ;;  %v1324_v17 = vadd.f32 %v1323_v15, %v1322_v11 }
 0x183   :  { %v1256_v18 = vpack.c.bf16 %v1058_v13, %v1058_v13  ;;  %v1263_v19 = vpack.c.bf16 %v1065_v16, %v1065_v16  ;;  %v1042_v20 = vadd.f32 %v1324_v17, %v1910_v14 }
 0x185   :  { %1139 = vst.msk [vmem:[%s1995_s3 + $0x14] sm:$0xf] %vm1133_vm5, %v1256_v18  ;;  %1146 = vst.msk [vmem:[%s1995_s3 + $0x30] sm:$0xf] %vm1133_vm5, %v1263_v19  ;;  %v1066_v21 = vmax.f32 %v1042_v20, 0.0 }
 0x187   :  { %v1264_v22 = vpack.c.bf16 %v1066_v21, %v1066_v21  ;;  %v1301_v23 = vpop.f32.mrf.mxu0 }
 0x189   :  { %1147 = vst.msk [vmem:[%s1995_s3 + $0x34] sm:$0xf] %vm1133_vm5, %v1264_v22  ;;  %v1302_v24 = vpop.f32.mrf.mxu0 }
 0x18a   :  { %v1303_v25 = vadd.f32 %v1302_v24, %v1301_v23 }
 0x18b   :  { %v1304_v26 = vpop.f32.mrf.mxu0  ;;  %v1325_v29 = vpop.f32.mrf.mxu1 }
 0x18c   :  { %v1015_v28 = vadd.f32 %v1303_v25, %v1910_v14 }
 0x18d   :  { %v1305_v30 = vpop.f32.mrf.mxu0  ;;  %v1326_v33 = vpop.f32.mrf.mxu1 }
 0x18e   :  { %v1059_v31 = vmax.f32 %v1015_v28, 0.0  ;;  %v1306_v32 = vadd.f32 %v1305_v30, %v1304_v26  ;;  %v1327_v34 = vadd.f32 %v1326_v33, %v1325_v29 }
 0x18f   :  { %v1328_v37 = vpop.f32.mrf.mxu1 }
 0x190   :  { %v1257_v35 = vpack.c.bf16 %v1059_v31, %v1059_v31  ;;  %v1018_v36 = vadd.f32 %v1306_v32, %v1910_v14  ;;  %v1047_v38 = vadd.f32 %v1327_v34, %v1910_v14 }
 0x191   :  { %v1329_v40 = vpop.f32.mrf.mxu1 }
 0x192   :  { %1140 = vst.msk [vmem:[%s1995_s3 + $0x18] sm:$0xf] %vm1133_vm5, %v1257_v35  ;;  %v1060_v39 = vmax.f32 %v1018_v36, 0.0  ;;  %v1067_v41 = vmax.f32 %v1047_v38, 0.0  ;;  %v1330_v42 = vadd.f32 %v1329_v40, %v1328_v37 }
 0x194   :  { %v1258_v43 = vpack.c.bf16 %v1060_v39, %v1060_v39  ;;  %v1265_v44 = vpack.c.bf16 %v1067_v41, %v1067_v41  ;;  %v1050_v45 = vadd.f32 %v1330_v42, %v1910_v14 }
 0x196   :  { %1141 = vst.msk [vmem:[%s1995_s3 + $0x1c] sm:$0xf] %vm1133_vm5, %v1258_v43  ;;  %1148 = vst.msk [vmem:[%s1995_s3 + $0x38] sm:$0xf] %vm1133_vm5, %v1265_v44  ;;  %v1068_v46 = vmax.f32 %v1050_v45, 0.0 }
 0x198   :  { %v1266_v47 = vpack.c.bf16 %v1068_v46, %v1068_v46 }
 0x19a   :  { %1149 = vst.msk [vmem:[%s1995_s3 + $0x3c] sm:$0xf] %vm1133_vm5, %v1266_v47 }

// kernel: atari_dqn_forward.7
= control target key start
LH: loop header
LB: loop body
LE: loop exit
PB: predicated region body
PF: predicated region fallthrough
CT: control target
= control target key end

     0   :  { %v345_v0 = vmov 0.0   ;;  %vm346_vm0 = vmmov 0   ;;  %s437_s1 = inlined_call_operand.vmem [shape: bf16[128,128], index: 1, kind: input, shape index: {}]   ;;  %s438_s3 = inlined_call_operand.vmem [shape: bf16[128,128], index: 3, kind: input, shape index: {}]   ;;  %s439_s0 = inlined_call_operand.vmem [shape: bf16[8,128], index: 0, kind: input, shape index: {}]   ;;  %s440_s2 = inlined_call_operand.vmem [shape: f32[1,128], index: 2, kind: input, shape index: {}]   ;;  %s441_s4 = inlined_call_operand.vmem [shape: f32[1,128], index: 4, kind: input, shape index: {}]   ;;  %s442_s5 = inlined_call_operand.vmem [shape: f32[8,128], index: 5, kind: output, shape index: {}]  }
   0x1   :  { %287 = vmatprep.subr.bf16.mxu0 %v345_v0  ;;  %v329_v1 = vld [vmem:[%s437_s1 + $0x38] sm:$0xff]   ;;  %303 = vmatprep.mubr.msk.bf16.mxu0 %vm346_vm0, %v345_v0  ;;  %v330_v2 = vld [vmem:[%s437_s1 + $0x30] sm:$0xff]   ;;  %v331_v3 = vld [vmem:[%s437_s1 + $0x28] sm:$0xff]  }
   0x2   :  { %307 = vmatprep.subr.bf16.mxu1 %v345_v0  ;;  %323 = vmatprep.mubr.msk.bf16.mxu1 %vm346_vm0, %v345_v0  ;;  %v337_v4 = vld [vmem:[%s438_s3 + $0x38] sm:$0xff]   ;;  %v332_v5 = vld [vmem:[%s437_s1 + $0x20] sm:$0xff]   ;;  %v338_v6 = vld [vmem:[%s438_s3 + $0x30] sm:$0xff]  }
   0x3   :  { %288 = vmatpush3.bf16.msra.mxu0 %v329_v1  ;;  %308 = vmatpush3.bf16.msra.mxu1 %v337_v4  ;;  %v333_v7 = vld [vmem:[%s437_s1 + $0x18] sm:$0xff]   ;;  %v339_v8 = vld [vmem:[%s438_s3 + $0x28] sm:$0xff]   ;;  %v334_v9 = vld [vmem:[%s437_s1 + $0x10] sm:$0xff]  }
   0x4   :  { %289 = vmatprep.subr.bf16.mxu0 %v345_v0  ;;  %309 = vmatprep.subr.bf16.mxu1 %v345_v0  ;;  %v340_v10 = vld [vmem:[%s438_s3 + $0x20] sm:$0xff]   ;;  %v335_v11 = vld [vmem:[%s437_s1 + $0x8] sm:$0xff]   ;;  %v341_v12 = vld [vmem:[%s438_s3 + $0x18] sm:$0xff]  }
   0x5   :  { %v336_v13 = vld [vmem:[%s437_s1] sm:$0xff]   ;;  %v342_v14 = vld [vmem:[%s438_s3 + $0x10] sm:$0xff]   ;;  %v343_v16 = vld [vmem:[%s438_s3 + $0x8] sm:$0xff]  }
   0x6   :  { %v21_v15 = vld [vmem:[%s439_s0] sm:$0xf] }
   0x7   :  { %290 = vmatpush3.bf16.msra.mxu0 %v330_v2  ;;  %310 = vmatpush3.bf16.msra.mxu1 %v338_v6  ;;  %v344_v17 = vld [vmem:[%s438_s3] sm:$0xff]  }
   0x8   :  { %291 = vmatprep.subr.bf16.mxu0 %v345_v0  ;;  %311 = vmatprep.subr.bf16.mxu1 %v345_v0  ;;  %v251_v18 = vld [vmem:[%s440_s2] ss:$0 sm:$0xff] }
   0x9   :  { %v260_v26 = vld [vmem:[%s441_s4] ss:$0 sm:$0xff] }
   0xb   :  { %292 = vmatpush3.bf16.msra.mxu0 %v331_v3  ;;  %312 = vmatpush3.bf16.msra.mxu1 %v339_v8 }
   0xc   :  { %293 = vmatprep.subr.bf16.mxu0 %v345_v0  ;;  %313 = vmatprep.subr.bf16.mxu1 %v345_v0 }
   0xf   :  { %294 = vmatpush3.bf16.msra.mxu0 %v332_v5  ;;  %314 = vmatpush3.bf16.msra.mxu1 %v340_v10 }
  0x10   :  { %295 = vmatprep.subr.bf16.mxu0 %v345_v0  ;;  %315 = vmatprep.subr.bf16.mxu1 %v345_v0 }
  0x13   :  { %296 = vmatpush3.bf16.msra.mxu0 %v333_v7  ;;  %316 = vmatpush3.bf16.msra.mxu1 %v341_v12 }
  0x14   :  { %297 = vmatprep.subr.bf16.mxu0 %v345_v0  ;;  %317 = vmatprep.subr.bf16.mxu1 %v345_v0 }
  0x17   :  { %298 = vmatpush3.bf16.msra.mxu0 %v334_v9  ;;  %318 = vmatpush3.bf16.msra.mxu1 %v342_v14 }
  0x18   :  { %299 = vmatprep.subr.bf16.mxu0 %v345_v0  ;;  %319 = vmatprep.subr.bf16.mxu1 %v345_v0 }
  0x1b   :  { %300 = vmatpush3.bf16.msra.mxu0 %v335_v11  ;;  %320 = vmatpush3.bf16.msra.mxu1 %v343_v16 }
  0x1c   :  { %301 = vmatprep.subr.bf16.mxu0 %v345_v0  ;;  %321 = vmatprep.subr.bf16.mxu1 %v345_v0 }
  0x1f   :  { %302 = vmatpush3.bf16.msra.mxu0 %v336_v13  ;;  %322 = vmatpush3.bf16.msra.mxu1 %v344_v17 }
  0x22   :  { %304 = vmatmul.mubr.bf16.vlgmr.msra.gmra.mxu0 %v21_v15 }
  0xe2   :  { %v127_v19 = vpop.f32.mrf.mxu0 }
  0xe3   :  { %v128_v20 = vadd.f32 %v251_v18, %v127_v19 }
  0xe4   :  { %v305_v21 = vpop.f32.mrf.mxu0 }
  0xe5   :  { %v133_v22 = vmax.f32 %v128_v20, 0.0 }
  0xe6   :  { %v130_v23 = vpop.f32.mrf.mxu0 }
  0xe7   :  { %v134_v24 = vpack.c.bf16 %v133_v22, %v133_v22 }
  0xe8   :  { %v306_v25 = vpop.f32.mrf.mxu0 }
  0xe9   :  { %324 = vmatmul.mubr.bf16.vlgmr.msra.gmra.mxu1 %v134_v24 }
 0x1a9   :  { %v240_v27 = vpop.f32.mrf.mxu1 }
 0x1aa   :  { %v241_v28 = vadd.f32 %v260_v26, %v240_v27 }
 0x1ab   :  { %v325_v29 = vpop.f32.mrf.mxu1 }
 0x1ac   :  { %246 = vst [vmem:[%s442_s5] sm:$0xff] %v241_v28 }
 0x1ad   :  { %v243_v30 = vpop.f32.mrf.mxu1 }
 0x1af   :  { %v326_v31 = vpop.f32.mrf.mxu1 }

// kernel: atari_dqn_forward.5
= control target key start
LH: loop header
LB: loop body
LE: loop exit
PB: predicated region body
PF: predicated region fallthrough
CT: control target
= control target key end

     0   :  { %v1274_v27 = vmov 1935823168   ;;  %v107_v29 = vlaneseq  ;;  %s1500_s1 = inlined_call_operand.vmem [shape: bf16[512,128], index: 1, kind: input, shape index: {}]   ;;  %s1501_s0 = inlined_call_operand.vmem [shape: bf16[2,4,4,128], index: 0, kind: input, shape index: {}]   ;;  %s1502_s2 = inlined_call_operand.vmem [shape: f32[1,128], index: 2, kind: input, shape index: {}]   ;;  %s1503_s3 = inlined_call_operand.vmem [shape: bf16[18,128], index: 3, kind: output, shape index: {}]  }
   0x1   :  { %v1233_v0 = vld [vmem:[%s1500_s1 + $0x78] sm:$0xff]   ;;  %v1237_v4 = vld [vmem:[%s1500_s1 + $0x70] sm:$0xff]   ;;  %v1241_v8 = vld [vmem:[%s1500_s1 + $0x68] sm:$0xff]   ;;  %v105_v28 = vunpack.c.l.s4 %v1274_v27 }
   0x2   :  { %v1234_v1 = vld [vmem:[%s1500_s1 + $0xf8] sm:$0xff]   ;;  %1176 = vmatprep.subr.bf16.mxu0 %v1233_v0  ;;  %v1238_v5 = vld [vmem:[%s1500_s1 + $0xf0] sm:$0xff]   ;;  %v1242_v9 = vld [vmem:[%s1500_s1 + $0xe8] sm:$0xff]   ;;  %v108_v35 = vshrl.u32 %v107_v29, 7 }
   0x3   :  { %v1235_v2 = vld [vmem:[%s1500_s1 + $0x38] sm:$0xff]   ;;  %1204 = vmatprep.subr.bf16.mxu1 %v1234_v1  ;;  %v1239_v6 = vld [vmem:[%s1500_s1 + $0x30] sm:$0xff]   ;;  %v1243_v10 = vld [vmem:[%s1500_s1 + $0x28] sm:$0xff]   ;;  %v106_v34 = vunpack.c.0.s8 %v105_v28 }
   0x4   :  { %v1236_v3 = vld [vmem:[%s1500_s1 + $0xb8] sm:$0xff]   ;;  %1177 = vmatpush3.bf16.msra.mxu0 %v1235_v2  ;;  %v1240_v7 = vld [vmem:[%s1500_s1 + $0xb0] sm:$0xff]   ;;  %v1244_v11 = vld [vmem:[%s1500_s1 + $0xa8] sm:$0xff]  }
   0x5   :  { %1205 = vmatpush3.bf16.msra.mxu1 %v1236_v3  ;;  %1178 = vmatprep.subr.bf16.mxu0 %v1237_v4  ;;  %v1245_v12 = vld [vmem:[%s1500_s1 + $0x60] sm:$0xff]   ;;  %v1249_v16 = vld [vmem:[%s1500_s1 + $0x58] sm:$0xff]   ;;  %v1253_v20 = vld [vmem:[%s1500_s1 + $0x50] sm:$0xff]   ;;  %v1409_v44 = vsub.s32 %v106_v34, %v108_v35 }
   0x6   :  { %1206 = vmatprep.subr.bf16.mxu1 %v1238_v5  ;;  %v1246_v13 = vld [vmem:[%s1500_s1 + $0xe0] sm:$0xff]   ;;  %v1250_v17 = vld [vmem:[%s1500_s1 + $0xd8] sm:$0xff]   ;;  %v1254_v21 = vld [vmem:[%s1500_s1 + $0xd0] sm:$0xff]  }
   0x7   :  { %v1247_v14 = vld [vmem:[%s1500_s1 + $0x20] sm:$0xff]   ;;  %v1251_v18 = vld [vmem:[%s1500_s1 + $0x18] sm:$0xff]   ;;  %v1255_v22 = vld [vmem:[%s1500_s1 + $0x10] sm:$0xff]  }
   0x8   :  { %1179 = vmatpush3.bf16.msra.mxu0 %v1239_v6  ;;  %v1248_v15 = vld [vmem:[%s1500_s1 + $0xa0] sm:$0xff]   ;;  %v1252_v19 = vld [vmem:[%s1500_s1 + $0x98] sm:$0xff]   ;;  %v1256_v23 = vld [vmem:[%s1500_s1 + $0x90] sm:$0xff]  }
   0x9   :  { %1207 = vmatpush3.bf16.msra.mxu1 %v1240_v7  ;;  %1180 = vmatprep.subr.bf16.mxu0 %v1241_v8  ;;  %v1257_v24 = vld [vmem:[%s1500_s1 + $0x48] sm:$0xff]   ;;  %v1261_v31 = vld [vmem:[%s1500_s1 + $0x40] sm:$0xff]  }
   0xa   :  { %1208 = vmatprep.subr.bf16.mxu1 %v1242_v9  ;;  %v1258_v25 = vld [vmem:[%s1500_s1 + $0xc8] sm:$0xff]   ;;  %v1262_v32 = vld [vmem:[%s1500_s1 + $0xc0] sm:$0xff]  }
   0xb   :  { %v1259_v26 = vld [vmem:[%s1500_s1 + $0x8] sm:$0xff]   ;;  %v1263_v33 = vld [vmem:[%s1500_s1] sm:$0xff]  }
   0xc   :  { %1181 = vmatpush3.bf16.msra.mxu0 %v1243_v10  ;;  %v1260_v30 = vld [vmem:[%s1500_s1 + $0x88] sm:$0xff]   ;;  %v1264_v36 = vld [vmem:[%s1500_s1 + $0x80] sm:$0xff]  }
   0xd   :  { %1209 = vmatpush3.bf16.msra.mxu1 %v1244_v11  ;;  %1182 = vmatprep.subr.bf16.mxu0 %v1245_v12  ;;  %v1058_v37 = vld.sshfl [vmem:[%s1501_s0] sm:$0x11 pattern:$0x75316420] }
   0xe   :  { %1210 = vmatprep.subr.bf16.mxu1 %v1246_v13  ;;  %v1397_v38 = vld.sshfl [vmem:[%s1501_s0 + $0x2] sm:$0x11 pattern:$0x75316420]  ;;  %v34_v39 = vcombine.high %v1058_v37, %v1058_v37  ;;  %v230_v40 = vunpack.i.h.s16 %v1058_v37 }
   0xf   :  { %v1402_v41 = vld.sshfl [vmem:[%s1501_s0 + $0x4] sm:$0x11 pattern:$0x75316420]  ;;  %v1406_v42 = vcombine.high %v1397_v38, %v1397_v38  ;;  %v79_v43 = vunpack.i.h.s16 %v1397_v38 }
  0x10   :  { %1183 = vmatpush3.bf16.msra.mxu0 %v1247_v14  ;;  %v1061_v45 = vld.sshfl [vmem:[%s1501_s0 + $0x8] sm:$0x11 pattern:$0x75316420]  ;;  %v1416_v46 = vcombine.high %v1402_v41, %v1402_v41  ;;  %v1064_v47 = vpack.i.b16 %v1397_v38, %v34_v39  ;;  %v232_v48 = vunpack.i.h.s16 %v34_v39  ;;  %v236_v49 = vunpack.i.h.s16 %v1402_v41 }
  0x11   :  { %1211 = vmatpush3.bf16.msra.mxu1 %v1248_v15  ;;  %1184 = vmatprep.subr.bf16.mxu0 %v1249_v16  ;;  %v1423_v50 = vld.sshfl [vmem:[%s1501_s0 + $0xa] sm:$0x11 pattern:$0x75316420]  ;;  %v58_v51 = vcombine.high %v1061_v45, %v1061_v45  ;;  %v85_v52 = vunpack.i.h.s16 %v1061_v45  ;;  %v1426_v53 = vpack.i.b16 %v1406_v42, %v79_v43  ;;  %v1079_v54 = vpack.i.b16 %v34_v39, %v230_v40 }
  0x12   :  { %1212 = vmatprep.subr.bf16.mxu1 %v1250_v17  ;;  %v1431_v55 = vld.sshfl [vmem:[%s1501_s0 + $0xc] sm:$0x11 pattern:$0x75316420]  ;;  %v1435_v56 = vcombine.high %v1423_v50, %v1423_v50  ;;  %v1066_v57 = vpack.i.b16 %v1061_v45, %v1416_v46  ;;  %v103_v58 = vcombine.low %v1064_v47, %v1402_v41  ;;  %v238_v59 = vunpack.i.h.s16 %v1416_v46 }
  0x13   :  { %v1067_v60 = vpack.i.b16 %v58_v51, %v85_v52  ;;  %v102_v61 = vcombine.low %v1058_v37, %v1426_v53  ;;  %v242_v62 = vunpack.i.h.s16 %v1423_v50  ;;  %v245_v63 = vunpack.i.h.s16 %v1431_v55  ;;  %v1093_v4 = vld.sshfl [vmem:[%s1501_s0 + $0x6] sm:$0x11 pattern:$0x75316420] }
  0x14   :  { %1185 = vmatpush3.bf16.msra.mxu0 %v1251_v18  ;;  %v1068_v0 = vpack.i.b16 %v1431_v55, %v1435_v56  ;;  %v117_v1 = vrot.slane %v103_v58, %v1409_v44  ;;  %v126_v2 = vcombine.low %v1066_v57, %v1423_v50  ;;  %v244_v3 = vunpack.i.h.s16 %v1435_v56 }
  0x15   :  { %1213 = vmatpush3.bf16.msra.mxu1 %v1252_v19  ;;  %1186 = vmatprep.subr.bf16.mxu0 %v1253_v20  ;;  %v110_v5 = vrot.slane %v102_v61, %v1409_v44  ;;  %v249_v6 = vpack.i.b16 %v79_v43, %v232_v48  ;;  %v1080_v7 = vpack.i.b16 %v1416_v46, %v236_v49  ;;  %v547_v37 = vunpack.i.h.s16 %v1093_v4 }
  0x16   :  { %1214 = vmatprep.subr.bf16.mxu1 %v1254_v21  ;;  %v252_v8 = vpack.i.b16 %v85_v52, %v238_v59  ;;  %v127_v9 = vcombine.low %v1067_v60, %v1068_v0  ;;  %v134_v10 = vrot.slane %v126_v2, %v1409_v44  ;;  %v1081_v11 = vpack.i.b16 %v1435_v56, %v242_v62 }
  0x17   :  { %v255_v12 = vpack.i.b16 %v245_v63, %v244_v3  ;;  %v118_v13 = vcombine.low %v110_v5, %v117_v1  ;;  %v257_v14 = vcombine.low %v1079_v54, %v1406_v42  ;;  %v258_v15 = vcombine.low %v249_v6, %v1080_v7 }
  0x18   :  { %1187 = vmatpush3.bf16.msra.mxu0 %v1255_v22  ;;  %v361_v16 = vcombine.high %v1093_v4, %v1093_v4  ;;  %v141_v17 = vrot.slane %v127_v9, %v1409_v44  ;;  %v281_v18 = vcombine.low %v252_v8, %v1081_v11  ;;  %v377_v20 = vcombine.high %v1431_v55, %v1431_v55 }
  0x19   :  { %1215 = vmatpush3.bf16.msra.mxu1 %v1256_v23  ;;  %1188 = vmatprep.subr.bf16.mxu0 %v1257_v24  ;;  %v282_v19 = vcombine.low %v58_v51, %v255_v12  ;;  %1070 = vst.sshfl [vmem:[#allocation2] sm:$0x33 pattern:$0x75316420] %v118_v13  ;;  %v265_v21 = vrot.slane %v257_v14, %v1409_v44 }
  0x1a   :  { %1216 = vmatprep.subr.bf16.mxu1 %v1258_v25  ;;  %v272_v22 = vrot.slane %v258_v15, %v1409_v44  ;;  %v1096_v23 = vld.sshfl [vmem:[%s1501_s0 + $0xe] sm:$0x11 pattern:$0x75316420]  ;;  %v1097_v24 = vpack.i.b16 %v1402_v41, %v1406_v42  ;;  %v1099_v25 = vpack.i.b16 %v1423_v50, %v361_v16  ;;  %v289_v27 = vrot.slane %v281_v18, %v1409_v44 }
  0x1b   :  { %v296_v28 = vrot.slane %v282_v19, %v1409_v44  ;;  %v1101_v29 = vpack.i.b16 %v1096_v23, %v377_v20  ;;  %v549_v45 = vunpack.i.h.s16 %v361_v16  ;;  %v555_v47 = vunpack.i.h.s16 %v377_v20 }
  0x1c   :  { %1189 = vmatpush3.bf16.msra.mxu0 %v1259_v26  ;;  %v142_v26 = vcombine.low %v134_v10, %v141_v17  ;;  %v556_v48 = vunpack.i.h.s16 %v1096_v23  ;;  %v1119_v52 = vpack.i.b16 %v361_v16, %v547_v37  ;;  %v1120_v54 = vpack.i.b16 %v377_v20, %v245_v63 }
  0x1d   :  { %1217 = vmatpush3.bf16.msra.mxu1 %v1260_v30  ;;  %1190 = vmatprep.subr.bf16.mxu0 %v1261_v31  ;;  %v273_v30 = vcombine.low %v265_v21, %v272_v22  ;;  %v413_v31 = vcombine.low %v1397_v38, %v1080_v7  ;;  %v297_v34 = vcombine.low %v289_v27, %v296_v28  ;;  %v1124_v21 = vld [vmem:[%s1502_s2] ss:$0 sm:$0xff] }
  0x1e   :  { %1218 = vmatprep.subr.bf16.mxu1 %v1262_v32  ;;  %v414_v32 = vcombine.low %v1097_v24, %v1093_v4  ;;  %1071 = vst.sshfl [vmem:[#allocation2 + $0x10] sm:$0x33 pattern:$0x75316420] %v142_v26  ;;  %v438_v35 = vcombine.low %v1081_v11, %v1101_v29  ;;  %v566_v57 = vpack.i.b16 %v556_v48, %v555_v47 }
  0x1f   :  { %1082 = vst.sshfl [vmem:[#allocation2 + $0x4] sm:$0x33 pattern:$0x75316420] %v273_v30  ;;  %v421_v39 = vrot.slane %v413_v31, %v1409_v44  ;;  %v568_v58 = vcombine.low %v1426_v53, %v1416_v46  ;;  %v311_v61 = vrot.slane %v377_v20, %v1409_v44  ;;  %v385_v0 = vcombine.high %v1096_v23, %v1096_v23 }
  0x20   :  { %1191 = vmatpush3.bf16.msra.mxu0 %v1263_v33  ;;  %v437_v33 = vcombine.low %v1099_v25, %v1431_v55  ;;  %v428_v40 = vrot.slane %v414_v32, %v1409_v44  ;;  %1083 = vst.sshfl [vmem:[#allocation2 + $0x14] sm:$0x33 pattern:$0x75316420] %v297_v34  ;;  %v452_v38 = vrot.slane %v438_v35, %v1409_v44 }
  0x21   :  { %1219 = vmatpush3.bf16.msra.mxu1 %v1264_v36  ;;  %v543_v36 = vunpack.i.h.s16 %v1406_v42  ;;  %v563_v42 = vpack.i.b16 %v242_v62, %v549_v45  ;;  %v576_v1 = vrot.slane %v568_v58, %v1409_v44  ;;  %v593_v41 = vcombine.low %v1435_v56, %v566_v57  ;;  %1084 = vst.sshfl [vmem:[#allocation2 + $0x24] sm:$0x1 pattern:$0x75316420] %v311_v61 }
  0x22   :  { %v445_v43 = vrot.slane %v437_v33, %v1409_v44  ;;  %v429_v51 = vcombine.low %v421_v39, %v428_v40  ;;  %v1102_v2 = vpack.i.b16 %v385_v0, %v556_v48  ;;  %v622_v46 = vrot.slane %v385_v0, %v1409_v44 }
  0x23   :  { %v560_v50 = vpack.i.b16 %v236_v49, %v543_v36  ;;  %v592_v60 = vcombine.low %v563_v42, %v1120_v54  ;;  %v156_v49 = vrot.slane %v1120_v54, %v1409_v44  ;;  %v607_v53 = vrot.slane %v593_v41, %v1409_v44 }
  0x24   :  { %v453_v55 = vcombine.low %v445_v43, %v452_v38  ;;  %1103 = vst.sshfl [vmem:[#allocation2 + $0x8] sm:$0x33 pattern:$0x75316420] %v429_v51  ;;  %v467_v6 = vrot.slane %v1102_v2, %v1409_v44 }
  0x25   :  { %v569_v59 = vcombine.low %v560_v50, %v1119_v52  ;;  %v600_v63 = vrot.slane %v592_v60, %v1409_v44  ;;  %1072 = vst.sshfl [vmem:[#allocation2 + $0x20] sm:$0x1 pattern:$0x75316420] %v156_v49  ;;  %v1265_v3 = vld [vmem:[#allocation2] ss:$16 sps:$4 sm:$0xff]  }
  0x26   :  { %1104 = vst.sshfl [vmem:[#allocation2 + $0x18] sm:$0x33 pattern:$0x75316420] %v453_v55 }
  0x27   :  { %v583_v62 = vrot.slane %v569_v59, %v1409_v44  ;;  %v1267_v4 = vld [vmem:[#allocation2 + $0x4] ss:$16 sps:$4 sm:$0xff]   ;;  %1123 = vst.sshfl [vmem:[#allocation2 + $0x2c] sm:$0x1 pattern:$0x75316420] %v622_v46  ;;  %v608_v56 = vcombine.low %v600_v63, %v607_v53 }
  0x28   :  { %971 = vmatprep.mubr.bf16.mxu0 %v1267_v4  ;;  %1105 = vst.sshfl [vmem:[#allocation2 + $0x28] sm:$0x1 pattern:$0x75316420] %v467_v6 }
  0x29   :  { %v584_v5 = vcombine.low %v576_v1, %v583_v62  ;;  %1122 = vst.sshfl [vmem:[#allocation2 + $0x1c] sm:$0x33 pattern:$0x75316420] %v608_v56  ;;  %972 = vmatmul.mubr.bf16.vlgmr.msra.gmra.mxu0 %v1265_v3 }
  0x2b   :  { %1121 = vst.sshfl [vmem:[#allocation2 + $0xc] sm:$0x33 pattern:$0x75316420] %v584_v5 }
  0x2c   :  { %v640_v7 = vld [vmem:[#allocation2 + $0x20] sm:$0x11] }
  0x2d   :  { %v1130_v8 = vcombine.high %v640_v7, %v640_v7  ;;  %v1129_v9 = vcombine.low %v640_v7, %v640_v7  ;;  %v1268_v11 = vld [vmem:[#allocation2 + $0x8] ss:$16 sps:$4 sm:$0xff]  }
  0x2f   :  { %979 = vmatprep.mubr.bf16.mxu0 %v1130_v8  ;;  %v641_v10 = vld [vmem:[#allocation2 + $0x28] sm:$0x11] }
  0x30   :  { %v1132_v13 = vcombine.high %v641_v10, %v641_v10  ;;  %v1131_v44 = vcombine.low %v641_v10, %v641_v10 }
  0x31   :  { %980 = vmatmul.mubr.bf16.gmra.mxu0 %v1129_v9 }
  0x32   :  { %v1270_v12 = vld [vmem:[#allocation2 + $0xc] ss:$16 sps:$4 sm:$0xff]  }
  0x33   :  { %1019 = vmatprep.mubr.bf16.mxu1 %v1270_v12 }
  0x34   :  { %1020 = vmatmul.mubr.bf16.vlgmr.msra.gmra.mxu1 %v1268_v11 }
  0x35   :  { %1027 = vmatprep.mubr.bf16.mxu1 %v1132_v13 }
  0x3c   :  { %1028 = vmatmul.mubr.bf16.gmra.mxu1 %v1131_v44 }
  0xe9   :  { %v1192_v14 = vpop.f32.mrf.mxu0 }
  0xeb   :  { %v1193_v15 = vpop.f32.mrf.mxu0 }
  0xec   :  { %v1194_v19 = vadd.f32 %v1193_v15, %v1192_v14 }
  0xed   :  { %v1195_v16 = vpop.f32.mrf.mxu0 }
  0xee   :  { %v974_v26 = vadd.f32 %v1194_v19, %v1124_v21 }
  0xef   :  { %v1196_v17 = vpop.f32.mrf.mxu0 }
  0xf0   :  { %v1197_v23 = vadd.f32 %v1196_v17, %v1195_v16 }
  0xf1   :  { %v1198_v18 = vpop.f32.mrf.mxu0 }
  0xf2   :  { %v977_v30 = vadd.f32 %v1197_v23, %v1124_v21 }
  0xf3   :  { %v1199_v22 = vpop.f32.mrf.mxu0 }
  0xf4   :  { %v1220_v20 = vpop.f32.mrf.mxu1  ;;  %v1200_v31 = vadd.f32 %v1199_v22, %v1198_v18 }
  0xf5   :  { %v1201_v25 = vpop.f32.mrf.mxu0 }
  0xf6   :  { %v1221_v24 = vpop.f32.mrf.mxu1  ;;  %v982_v37 = vadd.f32 %v1200_v31, %v1124_v21 }
  0xf7   :  { %v1202_v28 = vpop.f32.mrf.mxu0  ;;  %v1222_v29 = vadd.f32 %v1221_v24, %v1220_v20 }
  0xf8   :  { %v1223_v27 = vpop.f32.mrf.mxu1 }
  0xf9   :  { %v1022_v33 = vadd.f32 %v1222_v29, %v974_v26 }
  0xfa   :  { %v1224_v32 = vpop.f32.mrf.mxu1 }
  0xfb   :  { %v1225_v34 = vadd.f32 %v1224_v32, %v1223_v27  ;;  %v1035_v40 = vmax.f32 %v1022_v33, 0.0 }
  0xfc   :  { %v1226_v35 = vpop.f32.mrf.mxu1 }
  0xfd   :  { %v1025_v36 = vadd.f32 %v1225_v34, %v977_v30 }
  0xfe   :  { %v1227_v39 = vpop.f32.mrf.mxu1 }
  0xff   :  { %v1036_v43 = vmax.f32 %v1025_v36, 0.0  ;;  %v1228_v45 = vadd.f32 %v1227_v39, %v1226_v35 }
 0x100   :  { %v1229_v38 = vpop.f32.mrf.mxu1 }
 0x101   :  { %v1174_v47 = vpack.c.bf16 %v1036_v43, %v1035_v40  ;;  %v1030_v48 = vadd.f32 %v1228_v45, %v982_v37 }
 0x102   :  { %v1230_v50 = vpop.f32.mrf.mxu1 }
 0x103   :  { %v1037_v51 = vmax.f32 %v1030_v48, 0.0  ;;  %1175 = vst [vmem:[%s1503_s3] sm:$0xff] %v1174_v47  }
 0x105   :  { %v1170_v52 = vpack.c.bf16 %v1037_v51, %v1037_v51 }
 0x107   :  { %1053 = vst [vmem:[%s1503_s3 + $0x8] sm:$0x1] %v1170_v52 }

// kernel: atari_dqn_forward.6
= control target key start
LH: loop header
LB: loop body
LE: loop exit
PB: predicated region body
PF: predicated region fallthrough
CT: control target
= control target key end

     0   :  { %v1800_v21 = vmov 1935823168   ;;  %v36_v23 = vlaneseq  ;;  %v1801_v36 = vmov 1966171168   ;;  %vm64_vm0 = vcmask 1041409   ;;  %s2140_s1 = inlined_call_operand.vmem [shape: bf16[1152,128], index: 1, kind: input, shape index: {}]   ;;  %s2141_s0 = inlined_call_operand.vmem [shape: bf16[2,3,3,128], index: 0, kind: input, shape index: {}]   ;;  %s2142_s2 = inlined_call_operand.vmem [shape: f32[1,128], index: 2, kind: input, shape index: {}]   ;;  %s2143_s3 = inlined_call_operand.vmem [shape: bf16[2,128], index: 3, kind: output, shape index: {}]  }
   0x1   :  { %v1727_v0 = vld [vmem:[%s2140_s1 + $0x78] sm:$0xff]   ;;  %v1731_v4 = vld [vmem:[%s2140_s1 + $0x70] sm:$0xff]   ;;  %v1735_v8 = vld [vmem:[%s2140_s1 + $0x68] sm:$0xff]   ;;  %v34_v22 = vunpack.c.l.s4 %v1800_v21  ;;  %v68_v37 = vunpack.c.l.s4 %v1801_v36  ;;  %vm1803_vm1 = vmmov 0  }
   0x2   :  { %v1728_v1 = vld [vmem:[%s2140_s1 + $0x38] sm:$0xff]   ;;  %1606 = vmatprep.subr.bf16.mxu0 %v1727_v0  ;;  %v1732_v5 = vld [vmem:[%s2140_s1 + $0x30] sm:$0xff]   ;;  %v1736_v9 = vld [vmem:[%s2140_s1 + $0x28] sm:$0xff]   ;;  %v37_v29 = vshrl.u32 %v36_v23, 7 }
   0x3   :  { %v1729_v2 = vld [vmem:[%s2140_s1 + $0xf8] sm:$0xff]   ;;  %1607 = vmatpush3.bf16.msra.mxu0 %v1728_v1  ;;  %v1733_v6 = vld [vmem:[%s2140_s1 + $0xf0] sm:$0xff]   ;;  %v1737_v10 = vld [vmem:[%s2140_s1 + $0xe8] sm:$0xff]   ;;  %v35_v28 = vunpack.c.0.s8 %v34_v22  ;;  %v69_v43 = vunpack.c.0.s8 %v68_v37 }
   0x4   :  { %v1730_v3 = vld [vmem:[%s2140_s1 + $0xb8] sm:$0xff]   ;;  %1628 = vmatprep.subr.bf16.mxu1 %v1729_v2  ;;  %1608 = vmatprep.subr.bf16.mxu0 %v1731_v4  ;;  %v1734_v7 = vld [vmem:[%s2140_s1 + $0xb0] sm:$0xff]   ;;  %v1738_v11 = vld [vmem:[%s2140_s1 + $0xa8] sm:$0xff]  }
   0x5   :  { %1629 = vmatpush3.bf16.msra.mxu1 %v1730_v3  ;;  %v1739_v12 = vld [vmem:[%s2140_s1 + $0x60] sm:$0xff]   ;;  %v1743_v16 = vld [vmem:[%s2140_s1 + $0x58] sm:$0xff]   ;;  %v1747_v20 = vld [vmem:[%s2140_s1 + $0x50] sm:$0xff]   ;;  %v1911_v34 = vsub.s32 %v35_v28, %v37_v29  ;;  %v1949_v58 = vsub.s32 %v69_v43, %v37_v29 }
   0x6   :  { %1630 = vmatprep.subr.bf16.mxu1 %v1733_v6  ;;  %v1740_v13 = vld [vmem:[%s2140_s1 + $0x20] sm:$0xff]   ;;  %v1744_v17 = vld [vmem:[%s2140_s1 + $0x18] sm:$0xff]   ;;  %v1748_v24 = vld [vmem:[%s2140_s1 + $0x10] sm:$0xff]  }
   0x7   :  { %1609 = vmatpush3.bf16.msra.mxu0 %v1732_v5  ;;  %v1741_v14 = vld [vmem:[%s2140_s1 + $0xe0] sm:$0xff]   ;;  %v1745_v18 = vld [vmem:[%s2140_s1 + $0xd8] sm:$0xff]   ;;  %v1749_v25 = vld [vmem:[%s2140_s1 + $0xd0] sm:$0xff]  }
   0x8   :  { %1610 = vmatprep.subr.bf16.mxu0 %v1735_v8  ;;  %v1742_v15 = vld [vmem:[%s2140_s1 + $0xa0] sm:$0xff]   ;;  %v1746_v19 = vld [vmem:[%s2140_s1 + $0x98] sm:$0xff]   ;;  %v1750_v26 = vld [vmem:[%s2140_s1 + $0x90] sm:$0xff]  }
   0x9   :  { %1631 = vmatpush3.bf16.msra.mxu1 %v1734_v7  ;;  %v1751_v27 = vld [vmem:[%s2140_s1 + $0x48] sm:$0xff]   ;;  %v1755_v33 = vld [vmem:[%s2140_s1 + $0x40] sm:$0xff]   ;;  %v1760_v46 = vld [vmem:[%s2140_s1 + $0x178] sm:$0xff]  }
   0xa   :  { %1632 = vmatprep.subr.bf16.mxu1 %v1737_v10  ;;  %v1752_v30 = vld [vmem:[%s2140_s1 + $0x8] sm:$0xff]   ;;  %v1756_v35 = vld [vmem:[%s2140_s1] sm:$0xff]   ;;  %v1762_v7 = vld [vmem:[%s2140_s1 + $0x1f8] sm:$0xff]  }
   0xb   :  { %1611 = vmatpush3.bf16.msra.mxu0 %v1736_v9  ;;  %v1753_v31 = vld [vmem:[%s2140_s1 + $0xc8] sm:$0xff]   ;;  %v1757_v38 = vld [vmem:[%s2140_s1 + $0xc0] sm:$0xff]  }
   0xc   :  { %1612 = vmatprep.subr.bf16.mxu0 %v1739_v12  ;;  %v1754_v32 = vld [vmem:[%s2140_s1 + $0x88] sm:$0xff]   ;;  %v1493_v39 = vld.sshfl [vmem:[%s2141_s0] sm:$0x1 pattern:$0x75316420] }
   0xd   :  { %1633 = vmatpush3.bf16.msra.mxu1 %v1738_v11  ;;  %v1494_v40 = vld.sshfl [vmem:[%s2141_s0 + $0x6] sm:$0x1 pattern:$0x75316420]  ;;  %v39_v41 = vrot.slane %v1493_v39, %v1911_v34 }
   0xe   :  { %1634 = vmatprep.subr.bf16.mxu1 %v1741_v14  ;;  %v53_v42 = vrot.slane %v1494_v40, %v1911_v34  ;;  %v1499_v44 = vld.sshfl [vmem:[%s2141_s0] sm:$0x10 pattern:$0x75316420] }
   0xf   :  { %1613 = vmatpush3.bf16.msra.mxu0 %v1740_v13  ;;  %v1759_v45 = vld [vmem:[%s2140_s1 + $0x80] sm:$0xff]   ;;  %v46_v47 = vrot.slane %v39_v41, %v1911_v34  ;;  %v161_v49 = vcombine.high %v1499_v44, %v1499_v44  ;;  %v1505_v55 = vld.sshfl [vmem:[%s2141_s0 + $0x8] sm:$0x1 pattern:$0x75316420] }
  0x10   :  { %1614 = vmatprep.subr.bf16.mxu0 %v1743_v16  ;;  %v1500_v48 = vld.sshfl [vmem:[%s2141_s0 + $0x6] sm:$0x10 pattern:$0x75316420]  ;;  %v60_v50 = vrot.slane %v53_v42, %v1911_v34  ;;  %v258_v60 = vrot.slane %v1505_v55, %v1911_v34 }
  0x11   :  { %1635 = vmatpush3.bf16.msra.mxu1 %v1742_v15  ;;  %v169_v51 = vcombine.high %v1500_v48, %v1500_v48  ;;  %v1504_v52 = vld.sshfl [vmem:[%s2141_s0 + $0x2] sm:$0x1 pattern:$0x75316420]  ;;  %v61_v53 = vunpack.c.l.b16 %v46_v47  ;;  %v176_v54 = vrot.slane %v161_v49, %v1911_v34 }
  0x12   :  { %1636 = vmatprep.subr.bf16.mxu1 %v1745_v18  ;;  %v244_v56 = vrot.slane %v1504_v52, %v1911_v34  ;;  %v62_v57 = vunpack.c.l.b16 %v60_v50  ;;  %v1514_v61 = vld.sshfl [vmem:[%s2141_s0 + $0x2] sm:$0x10 pattern:$0x75316420]  ;;  %v265_v5 = vrot.slane %v258_v60, %v1911_v34 }
  0x13   :  { %1615 = vmatpush3.bf16.msra.mxu0 %v1744_v17  ;;  %v190_v59 = vrot.slane %v169_v51, %v1911_v34  ;;  %v131_v62 = vrot.slane %v61_v53, 1  ;;  %v183_v63 = vrot.slane %v176_v54, %v1911_v34  ;;  %v1515_v1 = vld.sshfl [vmem:[%s2141_s0 + $0x8] sm:$0x10 pattern:$0x75316420]  ;;  %v365_v2 = vcombine.high %v1514_v61, %v1514_v61 }
  0x14   :  { %1616 = vmatprep.subr.bf16.mxu0 %v1747_v20  ;;  %v251_v0 = vrot.slane %v244_v56, %v1911_v34  ;;  %v63_v3 = vrot.slane %v62_v57, 7  ;;  %v373_v6 = vcombine.high %v1515_v1, %v1515_v1  ;;  %v1519_v12 = vld.sshfl [vmem:[%s2141_s0 + $0x4] sm:$0x1 pattern:$0x75316420]  ;;  %v267_v16 = vunpack.c.l.b16 %v265_v5  ;;  %v1761_v1 = vld [vmem:[%s2140_s1 + $0x138] sm:$0xff]  }
  0x15   :  { %1637 = vmatpush3.bf16.msra.mxu1 %v1746_v19  ;;  %v197_v4 = vrot.slane %v190_v59, %v1911_v34  ;;  %v132_v8 = vsel %vm64_vm0, %v62_v57, %v131_v62  ;;  %v198_v9 = vunpack.c.l.b16 %v183_v63  ;;  %v380_v11 = vrot.slane %v365_v2, %v1911_v34  ;;  %v1520_v17 = vld.sshfl [vmem:[%s2141_s0 + $0xa] sm:$0x1 pattern:$0x75316420] }
  0x16   :  { %1638 = vmatprep.subr.bf16.mxu1 %v1749_v25  ;;  %v266_v10 = vunpack.c.l.b16 %v251_v0  ;;  %v65_v13 = vsel %vm64_vm0, %v63_v3, %v61_v53  ;;  %v133_v14 = vpack.c.b16 %v132_v8, %v132_v8  ;;  %v394_v21 = vrot.slane %v373_v6, %v1911_v34  ;;  %v1763_v6 = vld [vmem:[%s2140_s1 + $0x1b8] sm:$0xff]   ;;  %v1766_v8 = vld [vmem:[%s2140_s1 + $0x1f0] sm:$0xff]  }
  0x17   :  { %1617 = vmatpush3.bf16.msra.mxu0 %v1748_v24  ;;  %v199_v15 = vunpack.c.l.b16 %v197_v4  ;;  %v66_v18 = vpack.c.b16 %v65_v13, %v65_v13  ;;  %v387_v20 = vrot.slane %v380_v11, %v1911_v34  ;;  %v268_v24 = vrot.slane %v267_v16, 7  ;;  %v1764_v4 = vld [vmem:[%s2140_s1 + $0x170] sm:$0xff]   ;;  %v1768_v11 = vld [vmem:[%s2140_s1 + $0x168] sm:$0xff]  }
  0x18   :  { %1618 = vmatprep.subr.bf16.mxu0 %v1751_v27  ;;  %v335_v19 = vrot.slane %v266_v10, 1  ;;  %v140_v22 = vrot.slane %v133_v14, %v1949_v58  ;;  %v448_v25 = vrot.slane %v1519_v12, %v1911_v34  ;;  %v401_v28 = vrot.slane %v394_v21, %v1911_v34  ;;  %v1767_v12 = vld [vmem:[%s2140_s1 + $0x1b0] sm:$0xff]   ;;  %v1770_v13 = vld [vmem:[%s2140_s1 + $0x1e8] sm:$0xff]   ;;  %v1774_v21 = vld [vmem:[%s2140_s1 + $0x1e0] sm:$0xff]  }
  0x19   :  { %1639 = vmatpush3.bf16.msra.mxu1 %v1750_v26  ;;  %v200_v23 = vrot.slane %v199_v15, 7  ;;  %v73_v26 = vrot.slane %v66_v18, %v1949_v58  ;;  %v402_v29 = vunpack.c.l.b16 %v387_v20  ;;  %v1769_v14 = vld [vmem:[%s2140_s1 + $0x128] sm:$0xff]   ;;  %v1529_v15 = vld.sshfl [vmem:[%s2141_s0 + $0x4] sm:$0x10 pattern:$0x75316420] }
  0x1a   :  { %1640 = vmatprep.subr.bf16.mxu1 %v1753_v31  ;;  %v336_v27 = vsel %vm64_vm0, %v267_v16, %v335_v19  ;;  %1498 = vst.sshfl [vmem:[#allocation2 + $0x1] sm:$0x1 pattern:$0x73625140] %v140_v22  ;;  %v269_v31 = vsel %vm64_vm0, %v268_v24, %v266_v10  ;;  %v403_v37 = vunpack.c.l.b16 %v401_v28  ;;  %v1772_v16 = vld [vmem:[%s2140_s1 + $0x160] sm:$0xff]   ;;  %v569_v18 = vcombine.high %v1529_v15, %v1529_v15  ;;  %v1771_v19 = vld [vmem:[%s2140_s1 + $0x1a8] sm:$0xff]  }
  0x1b   :  { %1619 = vmatpush3.bf16.msra.mxu0 %v1752_v30  ;;  %v201_v30 = vsel %vm64_vm0, %v200_v23, %v198_v9  ;;  %1495 = vst.sshfl [vmem:[#allocation2] sm:$0x1 pattern:$0x73625140] %v73_v26  ;;  %v270_v36 = vpack.c.b16 %v269_v31, %v269_v31  ;;  %v1765_v9 = vld [vmem:[%s2140_s1 + $0x130] sm:$0xff]   ;;  %v1773_v23 = vld [vmem:[%s2140_s1 + $0x120] sm:$0xff]  }
  0x1c   :  { %1620 = vmatprep.subr.bf16.mxu0 %v1755_v33  ;;  %v455_v33 = vrot.slane %v448_v25, %v1911_v34  ;;  %v404_v43 = vrot.slane %v403_v37, 7  ;;  %v584_v22 = vrot.slane %v569_v18, %v1911_v34  ;;  %v1776_v25 = vld [vmem:[%s2140_s1 + $0x158] sm:$0xff]   ;;  %v1781_v37 = vld [vmem:[%s2140_s1 + $0x110] sm:$0xff]  }
  0x1d   :  { %1641 = vmatpush3.bf16.msra.mxu1 %v1754_v32  ;;  %v337_v32 = vpack.c.b16 %v336_v27, %v336_v27  ;;  %v277_v42 = vrot.slane %v270_v36, %v1949_v58  ;;  %v1775_v27 = vld [vmem:[%s2140_s1 + $0x1a0] sm:$0xff]   ;;  %v1782_v36 = vld [vmem:[%s2140_s1 + $0x1d0] sm:$0xff]  }
  0x1e   :  { %1642 = vmatprep.subr.bf16.mxu1 %v1757_v38  ;;  %v462_v38 = vrot.slane %v1520_v17, %v1911_v34  ;;  %v470_v40 = vunpack.c.l.b16 %v455_v33  ;;  %v1530_v17 = vld.sshfl [vmem:[%s2141_s0 + $0xa] sm:$0x10 pattern:$0x75316420]  ;;  %v591_v26 = vrot.slane %v584_v22, %v1911_v34  ;;  %v1780_v33 = vld [vmem:[%s2140_s1 + $0x150] sm:$0xff]  }
  0x1f   :  { %1621 = vmatpush3.bf16.msra.mxu0 %v1756_v35  ;;  %v202_v35 = vpack.c.b16 %v201_v30, %v201_v30  ;;  %v344_v39 = vrot.slane %v337_v32, %v1949_v58  ;;  %1506 = vst.sshfl [vmem:[#allocation2 + $0x3] sm:$0x1 pattern:$0x73625140] %v277_v42  ;;  %v577_v20 = vcombine.high %v1530_v17, %v1530_v17  ;;  %v1777_v30 = vld [vmem:[%s2140_s1 + $0x118] sm:$0xff]   ;;  %v1786_v42 = vld [vmem:[%s2140_s1 + $0x1c8] sm:$0xff]  }
  0x20   :  { %1650 = vmatprep.subr.bf16.mxu0 %v1760_v46  ;;  %v469_v44 = vrot.slane %v462_v38, %v1911_v34  ;;  %v405_v46 = vsel %vm64_vm0, %v404_v43, %v402_v29  ;;  %v1778_v29 = vld [vmem:[%s2140_s1 + $0x1d8] sm:$0xff]   ;;  %v606_v31 = vunpack.c.l.b16 %v591_v26 }
  0x21   :  { %1643 = vmatpush3.bf16.msra.mxu1 %v1759_v45  ;;  %v209_v41 = vrot.slane %v202_v35, %v1949_v58  ;;  %1511 = vst.sshfl [vmem:[#allocation2 + $0x4] sm:$0x1 pattern:$0x73625140] %v344_v39  ;;  %v539_v45 = vrot.slane %v470_v40, 1  ;;  %v406_v48 = vpack.c.b16 %v405_v46, %v405_v46  ;;  %v598_v24 = vrot.slane %v577_v20, %v1911_v34  ;;  %v1784_v39 = vld [vmem:[%s2140_s1 + $0x148] sm:$0xff]  }
  0x22   :  { %1672 = vmatprep.subr.bf16.mxu1 %v1762_v7  ;;  %v471_v47 = vunpack.c.l.b16 %v469_v44  ;;  %v1785_v44 = vld [vmem:[%s2140_s1 + $0x108] sm:$0xff]  }
  0x23   :  { %1501 = vst.sshfl [vmem:[#allocation2 + $0x2] sm:$0x1 pattern:$0x73625140] %v209_v41  ;;  %v413_v51 = vrot.slane %v406_v48, %v1949_v58  ;;  %v605_v28 = vrot.slane %v598_v24, %v1911_v34  ;;  %v1779_v34 = vld [vmem:[%s2140_s1 + $0x198] sm:$0xff]   ;;  %v1783_v41 = vld [vmem:[%s2140_s1 + $0x190] sm:$0xff]  }
  0x24   :  { %v472_v49 = vrot.slane %v471_v47, 7  ;;  %v540_v50 = vsel %vm64_vm0, %v471_v47, %v539_v45  ;;  %v1788_v45 = vld [vmem:[%s2140_s1 + $0x140] sm:$0xff]   ;;  %v1787_v46 = vld [vmem:[%s2140_s1 + $0x188] sm:$0xff]  }
  0x25   :  { %v541_v52 = vpack.c.b16 %v540_v50, %v540_v50  ;;  %1516 = vst.sshfl [vmem:[#allocation2 + $0x5] sm:$0x1 pattern:$0x73625140] %v413_v51  ;;  %v607_v32 = vunpack.c.l.b16 %v605_v28  ;;  %v1790_v47 = vld [vmem:[%s2140_s1 + $0x1c0] sm:$0xff]   ;;  %v1792_v51 = vld [vmem:[%s2140_s1 + $0x238] sm:$0xff]  }
  0x26   :  { %v473_v53 = vsel %vm64_vm0, %v472_v49, %v470_v40  ;;  %v1789_v48 = vld [vmem:[%s2140_s1 + $0x100] sm:$0xff]  }
  0x27   :  { %v474_v54 = vpack.c.b16 %v473_v53, %v473_v53  ;;  %v548_v55 = vrot.slane %v541_v52, %v1949_v58  ;;  %v608_v35 = vrot.slane %v607_v32, 7  ;;  %v1791_v50 = vld [vmem:[%s2140_s1 + $0x180] sm:$0xff]   ;;  %v1802_v52 = vmov 0.0  }
  0x29   :  { %v481_v56 = vrot.slane %v474_v54, %v1949_v58  ;;  %1526 = vst.sshfl [vmem:[#allocation2 + $0x7] sm:$0x1 pattern:$0x73625140] %v548_v55  ;;  %v609_v38 = vsel %vm64_vm0, %v608_v35, %v606_v31  ;;  %v1793_v54 = vld [vmem:[%s2140_s1 + $0x230] sm:$0xff]   ;;  %v1794_v55 = vld [vmem:[%s2140_s1 + $0x228] sm:$0xff]  }
  0x2a   :  { %v610_v40 = vpack.c.b16 %v609_v38, %v609_v38 }
  0x2b   :  { %1521 = vst.sshfl [vmem:[#allocation2 + $0x6] sm:$0x1 pattern:$0x73625140] %v481_v56  ;;  %v1795_v56 = vld [vmem:[%s2140_s1 + $0x220] sm:$0xff]  }
  0x2c   :  { %v617_v43 = vrot.slane %v610_v40, %v1949_v58 }
  0x2e   :  { %1531 = vst.sshfl [vmem:[#allocation2 + $0x8] sm:$0x1 pattern:$0x73625140] %v617_v43 }
  0x32   :  { %v627_v57 = vld [vmem:[#allocation2] sm:$0xff] }
  0x33   :  { %v782_v59 = vcombine.high %v627_v57, %v627_v57  ;;  %v789_v60 = vrot.slane %v627_v57, %v1949_v58  ;;  %v1796_v57 = vld [vmem:[%s2140_s1 + $0x218] sm:$0xff]  }
  0x35   :  { %v797_v61 = vcombine.high %v789_v60, %v789_v60  ;;  %v805_v62 = vrot.slane %v789_v60, %v1949_v58  ;;  %v1999_v63 = vrot.slane %v782_v59, %v1949_v58  ;;  %v1797_v59 = vld [vmem:[%s2140_s1 + $0x210] sm:$0xff]   ;;  %v1798_v60 = vld [vmem:[%s2140_s1 + $0x208] sm:$0xff]  }
  0x37   :  { %v819_v0 = vrot.slane %v797_v61, %v1949_v58  ;;  %v798_v2 = vcombine.high %v1999_v63, %v1999_v63  ;;  %v827_v3 = vcombine.high %v805_v62, %v805_v62  ;;  %v812_v49 = vrot.slane %v1999_v63, %v1949_v58  ;;  %v1799_v61 = vld [vmem:[%s2140_s1 + $0x200] sm:$0xff]  }
  0x39   :  { %1318 = vmatprep.mubr.bf16.mxu0 %v819_v0  ;;  %v829_v5 = vcombine.high %v819_v0, %v819_v0  ;;  %v826_v7 = vrot.slane %v798_v2, %v1949_v58  ;;  %v828_v53 = vcombine.high %v812_v49, %v812_v49 }
  0x3a   :  { %1319 = vmatmul.mubr.bf16.vlgmr.msra.gmra.mxu0 %v805_v62  ;;  %v1533_v62 = vld.sshfl [vmem:[#allocation2 + $0x8] sm:$0x1 pattern:$0x75316420] }
  0x3b   :  { %1358 = vmatprep.mubr.bf16.mxu1 %v829_v5  ;;  %1651 = vmatpush3.bf16.msra.mxu0 %v1761_v1  ;;  %v830_v10 = vcombine.high %v826_v7, %v826_v7  ;;  %v844_v63 = vrot.slane %v1533_v62, %v1949_v58  ;;  %v1532_v58 = vld [vmem:[%s2142_s2] ss:$0 sm:$0xff] }
  0x3c   :  { %1359 = vmatmul.mubr.bf16.vlgmr.msra.gmra.mxu1 %v827_v3  ;;  %1652 = vmatprep.subr.bf16.mxu0 %v1764_v4 }
  0x3d   :  { %1673 = vmatpush3.bf16.msra.mxu1 %v1763_v6  ;;  %1398 = vmatprep.mubr.bf16.mxu0 %v826_v7 }
  0x3e   :  { %1674 = vmatprep.subr.bf16.mxu1 %v1766_v8  ;;  %1438 = vmatprep.mubr.bf16.mxu1 %v830_v10 }
  0x3f   :  { %1653 = vmatpush3.bf16.msra.mxu0 %v1765_v9 }
  0x40   :  { %1654 = vmatprep.subr.bf16.mxu0 %v1768_v11 }
  0x41   :  { %1675 = vmatpush3.bf16.msra.mxu1 %v1767_v12 }
  0x42   :  { %1676 = vmatprep.subr.bf16.mxu1 %v1770_v13 }
  0x43   :  { %1655 = vmatpush3.bf16.msra.mxu0 %v1769_v14 }
  0x44   :  { %1656 = vmatprep.subr.bf16.mxu0 %v1772_v16 }
  0x45   :  { %1677 = vmatpush3.bf16.msra.mxu1 %v1771_v19 }
  0x46   :  { %1678 = vmatprep.subr.bf16.mxu1 %v1774_v21 }
  0x47   :  { %1657 = vmatpush3.bf16.msra.mxu0 %v1773_v23 }
  0x48   :  { %1658 = vmatprep.subr.bf16.mxu0 %v1776_v25 }
  0x49   :  { %1679 = vmatpush3.bf16.msra.mxu1 %v1775_v27 }
  0x4a   :  { %1680 = vmatprep.subr.bf16.mxu1 %v1778_v29 }
  0x4b   :  { %1659 = vmatpush3.bf16.msra.mxu0 %v1777_v30 }
  0x4c   :  { %1660 = vmatprep.subr.bf16.mxu0 %v1780_v33 }
  0x4d   :  { %1681 = vmatpush3.bf16.msra.mxu1 %v1779_v34 }
  0x4e   :  { %1682 = vmatprep.subr.bf16.mxu1 %v1782_v36 }
  0x4f   :  { %1661 = vmatpush3.bf16.msra.mxu0 %v1781_v37 }
  0x50   :  { %1662 = vmatprep.subr.bf16.mxu0 %v1784_v39 }
  0x51   :  { %1683 = vmatpush3.bf16.msra.mxu1 %v1783_v41 }
  0x52   :  { %1684 = vmatprep.subr.bf16.mxu1 %v1786_v42 }
  0x53   :  { %1663 = vmatpush3.bf16.msra.mxu0 %v1785_v44 }
  0x54   :  { %1664 = vmatprep.subr.bf16.mxu0 %v1788_v45 }
  0x55   :  { %1685 = vmatpush3.bf16.msra.mxu1 %v1787_v46 }
  0x56   :  { %1686 = vmatprep.subr.bf16.mxu1 %v1790_v47 }
  0x57   :  { %1665 = vmatpush3.bf16.msra.mxu0 %v1789_v48 }
  0x58   :  { %1703 = vmatprep.subr.bf16.mxu0 %v1802_v52 }
  0x59   :  { %1687 = vmatpush3.bf16.msra.mxu1 %v1791_v50 }
  0x5a   :  { %1399 = vmatmul.mubr.bf16.vlgmr.msra.gmra.mxu0 %v812_v49 }
  0x5b   :  { %1704 = vmatpush3.bf16.msra.mxu0 %v1792_v51  ;;  %1719 = vmatprep.mubr.msk.bf16.mxu0 %vm1803_vm1, %v1802_v52 }
  0x5c   :  { %1439 = vmatmul.mubr.bf16.vlgmr.msra.gmra.mxu1 %v828_v53  ;;  %1705 = vmatprep.subr.bf16.mxu0 %v1802_v52 }
  0x5f   :  { %1706 = vmatpush3.bf16.msra.mxu0 %v1793_v54 }
  0x60   :  { %1707 = vmatprep.subr.bf16.mxu0 %v1802_v52 }
  0x63   :  { %1708 = vmatpush3.bf16.msra.mxu0 %v1794_v55 }
  0x64   :  { %1709 = vmatprep.subr.bf16.mxu0 %v1802_v52 }
  0x67   :  { %1710 = vmatpush3.bf16.msra.mxu0 %v1795_v56 }
  0x68   :  { %1711 = vmatprep.subr.bf16.mxu0 %v1802_v52 }
  0x6b   :  { %1712 = vmatpush3.bf16.msra.mxu0 %v1796_v57 }
  0x6c   :  { %1713 = vmatprep.subr.bf16.mxu0 %v1802_v52 }
  0x6f   :  { %1714 = vmatpush3.bf16.msra.mxu0 %v1797_v59 }
  0x70   :  { %1715 = vmatprep.subr.bf16.mxu0 %v1802_v52 }
  0x73   :  { %1716 = vmatpush3.bf16.msra.mxu0 %v1798_v60 }
  0x74   :  { %1717 = vmatprep.subr.bf16.mxu0 %v1802_v52 }
  0x77   :  { %1718 = vmatpush3.bf16.msra.mxu0 %v1799_v61 }
  0x7a   :  { %1720 = vmatmul.mubr.bf16.vlgmr.msra.gmra.mxu0 %v844_v63 }
  0xfa   :  { %v1622_v0 = vpop.f32.mrf.mxu0 }
  0xfc   :  { %v1623_v1 = vpop.f32.mrf.mxu0  ;;  %v1644_v2 = vpop.f32.mrf.mxu1 }
  0xfd   :  { %v1624_v16 = vadd.f32 %v1623_v1, %v1622_v0 }
  0xfe   :  { %v1625_v3 = vpop.f32.mrf.mxu0  ;;  %v1645_v4 = vpop.f32.mrf.mxu1 }
  0xff   :  { %v1321_v17 = vadd.f32 %v1624_v16, %v1532_v58  ;;  %v1646_v18 = vadd.f32 %v1645_v4, %v1644_v2 }
 0x100   :  { %v1626_v5 = vpop.f32.mrf.mxu0  ;;  %v1647_v6 = vpop.f32.mrf.mxu1 }
 0x101   :  { %v1361_v20 = vadd.f32 %v1646_v18, %v1321_v17 }
 0x102   :  { %v1648_v7 = vpop.f32.mrf.mxu1 }
 0x11a   :  { %v1666_v8 = vpop.f32.mrf.mxu0 }
 0x11c   :  { %v1667_v9 = vpop.f32.mrf.mxu0  ;;  %v1688_v10 = vpop.f32.mrf.mxu1 }
 0x11d   :  { %v1668_v19 = vadd.f32 %v1667_v9, %v1666_v8 }
 0x11e   :  { %v1669_v11 = vpop.f32.mrf.mxu0  ;;  %v1689_v12 = vpop.f32.mrf.mxu1 }
 0x11f   :  { %v1401_v21 = vadd.f32 %v1668_v19, %v1361_v20  ;;  %v1690_v22 = vadd.f32 %v1689_v12, %v1688_v10 }
 0x120   :  { %v1670_v13 = vpop.f32.mrf.mxu0  ;;  %v1691_v14 = vpop.f32.mrf.mxu1 }
 0x121   :  { %v1441_v23 = vadd.f32 %v1690_v22, %v1401_v21 }
 0x122   :  { %v1692_v15 = vpop.f32.mrf.mxu1 }
 0x13a   :  { %v1480_v24 = vpop.f32.mrf.mxu0 }
 0x13b   :  { %v1481_v25 = vadd.f32 %v1480_v24, %v1441_v23 }
 0x13c   :  { %v1721_v26 = vpop.f32.mrf.mxu0 }
 0x13d   :  { %v1486_v27 = vmax.f32 %v1481_v25, 0.0 }
 0x13e   :  { %v1483_v28 = vpop.f32.mrf.mxu0 }
 0x13f   :  { %v1487_v29 = vpack.c.bf16 %v1486_v27, %v1486_v27 }
 0x140   :  { %v1722_v30 = vpop.f32.mrf.mxu0 }
 0x141   :  { %1488 = vst [vmem:[%s2143_s3] sm:$0x1] %v1487_v29 }

</bundles_post_ra>
